<compile_context>
chip_gen: v7x
topology: tpu7x:2x2x1
jax: 0.10.0
libtpu: 0.0.40
codegen_flags: <defaults>
</compile_context>

<pallas_src>
import functools

import jax
import jax.numpy as jnp
from jax.experimental import pallas as pl
from jax.experimental.pallas import tpu as pltpu

NEG_SLOPE = 0.1
EPS = 1e-5
# Explicit scoped-VMEM cap: above v5e's 16 MiB default (needed for the largest
# WRN layers where the resident weight block is ~7 MiB double-buffered), below
# v7x's 64 MiB physical per-TC.
VMEM_LIMIT_BYTES = 48 * 1024 * 1024


def _round_up(x, m):
    return (x + m - 1) // m * m


def _lrelu(v):
    return jnp.where(v >= 0, v, NEG_SLOPE * v)


# ----------------------------------------------------------------------------
# Kernels.  One grid step == one sample.
#
# x_ref : (S_in, Cin)  bf16  -- padded image, rows flattened (row width W+2),
#                              plus >= 2 trailing zero rows so every tap window
#                              stays in bounds.
# w_ref : (9, Cin, Cout) bf16 -- tap-major conv weights (fetched once).
# The conv output has W+2 columns per row; the last 2 ("junk") columns per row
# are garbage and are dropped by the wrapper.
# ----------------------------------------------------------------------------
def _tap_matmuls(x_ref, w_ref, *, wp, m):
    # Load once, upcast to f32 so the 9 sublane-unaligned window slices are
    # plain 32-bit relayouts (robust); cast back to bf16 right at the MXU.
    x = x_ref[...].astype(jnp.float32)
    acc = None
    for t in range(9):
        off = (t // 3) * wp + (t % 3)                     # static tap offset
        a = x[off:off + m, :].astype(jnp.bfloat16)        # (m, Cin) window
        d = jnp.dot(a, w_ref[t], preferred_element_type=jnp.float32)
        acc = d if acc is None else acc + d
    return acc


def _conv_bn_act_kernel(x_ref, w_ref, s_ref, b_ref, o_ref, *, wp, m):
    """conv1: 3x3 conv with fused bn2 + LeakyReLU epilogue, bf16 output."""
    acc = _tap_matmuls(x_ref, w_ref, wp=wp, m=m)
    o_ref[...] = _lrelu(acc * s_ref[...] + b_ref[...]).astype(o_ref.dtype)


def _conv_kernel(x_ref, w_ref, o_ref, *, wp, m):
    """conv2 (identity-residual variant): plain 3x3 conv, f32 output."""
    o_ref[...] = _tap_matmuls(x_ref, w_ref, wp=wp, m=m).astype(o_ref.dtype)


def _conv_shortcut_kernel(x_ref, w_ref, xs_ref, wsc_ref, o_ref, *, wp, m):
    """conv2 + fused 1x1-shortcut matmul (rides the same accumulation)."""
    acc = _tap_matmuls(x_ref, w_ref, wp=wp, m=m)
    acc = acc + jnp.dot(xs_ref[...], wsc_ref[...],
                        preferred_element_type=jnp.float32)
    o_ref[...] = acc.astype(o_ref.dtype)


# ----------------------------------------------------------------------------
# Wrapper: stride-1 3x3 "same" convolution via the flat-window tap kernel.
# ----------------------------------------------------------------------------
def conv3x3_same(x_nhwc, w_oihw, *, post_scale=None, post_bias=None,
                 shortcut=None, out_dtype=jnp.float32):
    assert not (post_scale is not None and shortcut is not None)
    n, h, w, cin = x_nhwc.shape
    cout = w_oihw.shape[0]
    wp = w + 2                                   # row width incl. L/R zero pad
    m = h * wp                                   # per-sample out rows (incl. 2 junk cols/row)
    s_in = _round_up((h + 2) * wp + 2, 8)        # per-sample flattened input rows
    assert m % 8 == 0, "H*(W+2) must be a multiple of 8"

    # One fused XLA pass: cast bf16, spatial zero-pad, flatten per sample.
    xp = jnp.pad(x_nhwc.astype(jnp.bfloat16), ((0, 0), (1, 1), (1, 1), (0, 0)))
    xf = xp.reshape(n, (h + 2) * wp, cin)
    xf = jnp.pad(xf, ((0, 0), (0, s_in - (h + 2) * wp), (0, 0)))
    xf = xf.reshape(n * s_in, cin)

    wt = jnp.transpose(w_oihw, (2, 3, 1, 0)).reshape(9, cin, cout)
    wt = wt.astype(jnp.bfloat16)

    args = [xf, wt]
    in_specs = [pl.BlockSpec((s_in, cin), lambda i: (i, 0)),
                pl.BlockSpec((9, cin, cout), lambda i: (0, 0, 0))]
    flops = 2 * n * m * 9 * cin * cout
    bytes_accessed = (xf.size * 2 + wt.size * 2
                      + n * m * cout * jnp.dtype(out_dtype).itemsize)

    if post_scale is not None:
        args += [post_scale.reshape(1, cout).astype(jnp.float32),
                 post_bias.reshape(1, cout).astype(jnp.float32)]
        in_specs += [pl.BlockSpec((1, cout), lambda i: (0, 0)),
                     pl.BlockSpec((1, cout), lambda i: (0, 0))]
        kernel = functools.partial(_conv_bn_act_kernel, wp=wp, m=m)
    elif shortcut is not None:
        xs, wsc = shortcut                       # xs: (n, h, w, cin2); wsc: (cin2, cout)
        cin2 = xs.shape[-1]
        # Lay the shortcut input out in the same flat (junk-column) row layout.
        xs_f = jnp.pad(xs.astype(jnp.bfloat16), ((0, 0), (0, 0), (0, 2), (0, 0)))
        xs_f = xs_f.reshape(n * m, cin2)
        args += [xs_f, wsc.astype(jnp.bfloat16)]
        in_specs += [pl.BlockSpec((m, cin2), lambda i: (i, 0)),
                     pl.BlockSpec((cin2, cout), lambda i: (0, 0))]
        kernel = functools.partial(_conv_shortcut_kernel, wp=wp, m=m)
        flops += 2 * n * m * cin2 * cout
        bytes_accessed += xs_f.size * 2 + wsc.size * 2
    else:
        kernel = functools.partial(_conv_kernel, wp=wp, m=m)

    out_flat = pl.pallas_call(
        kernel,
        out_shape=jax.ShapeDtypeStruct((n * m, cout), out_dtype),
        grid_spec=pltpu.PrefetchScalarGridSpec(
            num_scalar_prefetch=0,
            grid=(n,),
            in_specs=in_specs,
            out_specs=pl.BlockSpec((m, cout), lambda i: (i, 0))),
        compiler_params=pltpu.CompilerParams(
            dimension_semantics=("parallel",),
            vmem_limit_bytes=VMEM_LIMIT_BYTES),
        cost_estimate=pl.CostEstimate(flops=flops, transcendentals=0,
                                      bytes_accessed=bytes_accessed),
    )(*args)

    # Drop the 2 junk columns per row; XLA fuses this with the caller's
    # residual add / subsample / NHWC->NCHW transpose.
    return out_flat.reshape(n, h, wp, cout)[:, :, :w, :]


# ----------------------------------------------------------------------------
# BN folding (inference) and the BasicBlock forward: 2 pallas_calls per block.
# ----------------------------------------------------------------------------
def fold_bn(bn):
    scale = bn["gamma"] * jax.lax.rsqrt(bn["var"] + EPS)
    bias = bn["beta"] - bn["mean"] * scale
    return scale, bias


@functools.partial(jax.jit, static_argnames=("stride", "activate_before_residual"))
def basic_block_forward(x_nchw, params, *, stride, activate_before_residual):
    out_planes, in_planes = params["conv1_w"].shape[:2]
    equal_in_out = in_planes == out_planes
    if equal_in_out:
        assert stride == 1, "identity shortcut requires stride == 1"

    x_nhwc = jnp.transpose(x_nchw, (0, 2, 3, 1)).astype(jnp.float32)

    bn1_scale, bn1_bias = fold_bn(params["bn1"])     # (Cin,)
    bn2_scale, bn2_bias = fold_bn(params["bn2"])     # (Cout,)

    # bn1 + LeakyReLU applied ONCE per element (fused by XLA into conv1's
    # pad/flatten pass); never recomputed per tap inside the kernel.
    conv1_act = equal_in_out or activate_before_residual
    act_x = _lrelu(x_nhwc * bn1_scale + bn1_bias) if conv1_act else None

    # --- conv1 (3x3) with fused bn2+lrelu epilogue, bf16 output -------------
    conv1_in = act_x if conv1_act else x_nhwc
    a1 = conv3x3_same(conv1_in, params["conv1_w"],
                      post_scale=bn2_scale, post_bias=bn2_bias,
                      out_dtype=jnp.bfloat16)
    if stride > 1:
        # TODO(synk): computed at stride 1 and subsampled; phase-decomposed
        # stride-2 tap kernel is future work.
        a1 = a1[:, ::stride, ::stride, :]

    # TODO(synk): dropout (drop_rate > 0 in training mode) is not implemented.

    # --- conv2 (3x3, stride 1) with fused residual handling -----------------
    if equal_in_out:
        y = conv3x3_same(a1, params["conv2_w"], out_dtype=jnp.float32)
        y = y + x_nhwc            # identity residual, fused into output relayout
    else:
        xs_src = act_x if activate_before_residual else x_nhwc
        xs = xs_src[:, ::stride, ::stride, :]
        w_sc = params["conv_sc_w"].reshape(out_planes, in_planes).T
        y = conv3x3_same(a1, params["conv2_w"], shortcut=(xs, w_sc),
                         out_dtype=jnp.float32)

    return jnp.transpose(y, (0, 3, 1, 2))


# ----------------------------------------------------------------------------
# Pure-JAX reference (for correctness checking)
# ----------------------------------------------------------------------------
def ref_forward(x, params, *, stride, activate_before_residual):
    def bn(v, p):
        s = p["gamma"] * jax.lax.rsqrt(p["var"] + EPS)
        b = p["beta"] - p["mean"] * s
        return v * s[None, :, None, None] + b[None, :, None, None]

    def lrelu(v):
        return jnp.where(v >= 0, v, NEG_SLOPE * v)

    def conv(v, w, stride, pad):
        return jax.lax.conv_general_dilated(
            v, w, (stride, stride), [(pad, pad), (pad, pad)],
            dimension_numbers=("NCHW", "OIHW", "NCHW"))

    equal_in_out = params["conv1_w"].shape[0] == params["conv1_w"].shape[1]
    if (not equal_in_out) and activate_before_residual:
        x = lrelu(bn(x, params["bn1"]))
        out = None
    else:
        out = lrelu(bn(x, params["bn1"]))
    out = lrelu(bn(conv(out if equal_in_out else x, params["conv1_w"], stride, 1),
                   params["bn2"]))
    out = conv(out, params["conv2_w"], 1, 1)
    shortcut = x if equal_in_out else conv(x, params["conv_sc_w"], stride, 0)
    return shortcut + out


# ----------------------------------------------------------------------------
# Deterministic parameter init + checks
# ----------------------------------------------------------------------------
def make_params(key, in_planes, out_planes):
    ks = jax.random.split(key, 11)

    def bn_params(k0, k1, k2, k3, c):
        return {
            "gamma": 0.5 + jax.random.uniform(k0, (c,), jnp.float32),
            "beta": 0.1 * jax.random.normal(k1, (c,), jnp.float32),
            "mean": 0.1 * jax.random.normal(k2, (c,), jnp.float32),
            "var": 0.5 + jax.random.uniform(k3, (c,), jnp.float32),
        }

    params = {
        "bn1": bn_params(ks[0], ks[1], ks[2], ks[3], in_planes),
        "conv1_w": 0.1 * jax.random.normal(ks[4], (out_planes, in_planes, 3, 3),
                                           jnp.float32),
        "bn2": bn_params(ks[5], ks[6], ks[7], ks[8], out_planes),
        "conv2_w": 0.1 * jax.random.normal(ks[9], (out_planes, out_planes, 3, 3),
                                           jnp.float32),
    }
    if in_planes != out_planes:
        params["conv_sc_w"] = 0.1 * jax.random.normal(
            ks[10], (out_planes, in_planes, 1, 1), jnp.float32)
    return params


def _check(y, r, tag):
    err = float(jnp.max(jnp.abs(y - r)) / (jnp.max(jnp.abs(r)) + 1e-6))
    assert err < 2e-2, f"mismatch ({tag}): normalized max error {err}"


# ----------------------------------------------------------------------------
if __name__ == "__main__":
    key = jax.random.PRNGKey(0)
    kx1, kp1, kx2, kp2, kx3, kp3 = jax.random.split(key, 6)

    # Case 1: in != out, stride 2, activate_before_residual=True
    # (activated conv1 input AND activated 1x1-shortcut input, fused shortcut matmul)
    x1 = jax.random.normal(kx1, (2, 4, 16, 16), jnp.float32)
    p1 = make_params(kp1, 4, 8)
    y1 = jax.block_until_ready(
        basic_block_forward(x1, p1, stride=2, activate_before_residual=True))
    r1 = ref_forward(x1, p1, stride=2, activate_before_residual=True)
    assert y1.shape == (2, 8, 8, 8)
    _check(y1, r1, "shortcut+act")

    # Case 2: equalInOut (identity residual), stride 1
    x2 = jax.random.normal(kx2, (2, 8, 16, 16), jnp.float32)
    p2 = make_params(kp2, 8, 8)
    y2 = jax.block_until_ready(
        basic_block_forward(x2, p2, stride=1, activate_before_residual=False))
    r2 = ref_forward(x2, p2, stride=1, activate_before_residual=False)
    assert y2.shape == (2, 8, 16, 16)
    _check(y2, r2, "identity")

    # Case 3: in != out, stride 2, activate_before_residual=False
    # (conv1 and shortcut both consume raw x)
    x3 = jax.random.normal(kx3, (2, 4, 16, 16), jnp.float32)
    p3 = make_params(kp3, 4, 8)
    y3 = jax.block_until_ready(
        basic_block_forward(x3, p3, stride=2, activate_before_residual=False))
    r3 = ref_forward(x3, p3, stride=2, activate_before_residual=False)
    assert y3.shape == (2, 8, 8, 8)
    _check(y3, r3, "shortcut-plain")

    print("KERNEL_OK")
</pallas_src>

<mosaic_0001>
module attributes {stable_mosaic.version = 11 : i64} {
  func.func @_conv_bn_act_kernel(%arg0: i32, %arg1: memref<328x4xbf16, #tpu.memory_space<vmem>>, %arg2: memref<9x4x8xbf16, #tpu.memory_space<vmem>>, %arg3: memref<1x8xf32, #tpu.memory_space<vmem>>, %arg4: memref<1x8xf32, #tpu.memory_space<vmem>>, %arg5: memref<288x8xbf16, #tpu.memory_space<vmem>>) attributes {dimension_semantics = [#tpu.dimension_semantics<parallel>], iteration_bounds = array<i64: 2>, scalar_prefetch = 0 : i64, scratch_operands = 0 : i64, tpu.core_type = #tpu.core_type<tc>, window_params = [{transform_indices = @transform_0, window_bounds = array<i64: 328, 4>}, {pipeline_mode = #tpu.pipeline_mode<synchronous>, transform_indices = @transform_1, window_bounds = array<i64: 9, 4, 8>}, {pipeline_mode = #tpu.pipeline_mode<synchronous>, transform_indices = @transform_2, window_bounds = array<i64: 1, 8>}, {pipeline_mode = #tpu.pipeline_mode<synchronous>, transform_indices = @transform_3, window_bounds = array<i64: 1, 8>}, {transform_indices = @transform_4, window_bounds = array<i64: 288, 8>}]} {
    %c0 = arith.constant 0 : index
    %c0_0 = arith.constant 0 : index
    %0 = vector.load %arg1[%c0, %c0_0] : memref<328x4xbf16, #tpu.memory_space<vmem>>, vector<328x4xbf16>
    %1 = arith.extf %0 : vector<328x4xbf16> to vector<328x4xf32>
    %2 = vector.extract_strided_slice %1 {offsets = [0, 0], sizes = [288, 4], strides = [1, 1]} : vector<328x4xf32> to vector<288x4xf32>
    %3 = arith.truncf %2 : vector<288x4xf32> to vector<288x4xbf16>
    %c0_1 = arith.constant 0 : index
    %c0_2 = arith.constant 0 : index
    %c0_3 = arith.constant 0 : index
    %4 = vector.load %arg2[%c0_1, %c0_2, %c0_3] : memref<9x4x8xbf16, #tpu.memory_space<vmem>>, vector<1x4x8xbf16>
    %5 = vector.shape_cast %4 : vector<1x4x8xbf16> to vector<4x8xbf16>
    %cst = arith.constant dense<0.000000e+00> : vector<288x8xf32>
    %6 = tpu.matmul %3, %5, %cst {dimension_numbers = #tpu.dot_dimension_numbers<[1], [0], [0], [1], [0, 0, 1, 1], [], []>} : vector<288x4xbf16>, vector<4x8xbf16>, vector<288x8xf32> -> vector<288x8xf32>
    %7 = vector.extract_strided_slice %1 {offsets = [1, 0], sizes = [288, 4], strides = [1, 1]} : vector<328x4xf32> to vector<288x4xf32>
    %8 = arith.truncf %7 : vector<288x4xf32> to vector<288x4xbf16>
    %c1 = arith.constant 1 : index
    %c0_4 = arith.constant 0 : index
    %c0_5 = arith.constant 0 : index
    %9 = vector.load %arg2[%c1, %c0_4, %c0_5] : memref<9x4x8xbf16, #tpu.memory_space<vmem>>, vector<1x4x8xbf16>
    %10 = vector.shape_cast %9 : vector<1x4x8xbf16> to vector<4x8xbf16>
    %cst_6 = arith.constant dense<0.000000e+00> : vector<288x8xf32>
    %11 = tpu.matmul %8, %10, %cst_6 {dimension_numbers = #tpu.dot_dimension_numbers<[1], [0], [0], [1], [0, 0, 1, 1], [], []>} : vector<288x4xbf16>, vector<4x8xbf16>, vector<288x8xf32> -> vector<288x8xf32>
    %12 = arith.addf %6, %11 : vector<288x8xf32>
    %13 = vector.extract_strided_slice %1 {offsets = [2, 0], sizes = [288, 4], strides = [1, 1]} : vector<328x4xf32> to vector<288x4xf32>
    %14 = arith.truncf %13 : vector<288x4xf32> to vector<288x4xbf16>
    %c2 = arith.constant 2 : index
    %c0_7 = arith.constant 0 : index
    %c0_8 = arith.constant 0 : index
    %15 = vector.load %arg2[%c2, %c0_7, %c0_8] : memref<9x4x8xbf16, #tpu.memory_space<vmem>>, vector<1x4x8xbf16>
    %16 = vector.shape_cast %15 : vector<1x4x8xbf16> to vector<4x8xbf16>
    %cst_9 = arith.constant dense<0.000000e+00> : vector<288x8xf32>
    %17 = tpu.matmul %14, %16, %cst_9 {dimension_numbers = #tpu.dot_dimension_numbers<[1], [0], [0], [1], [0, 0, 1, 1], [], []>} : vector<288x4xbf16>, vector<4x8xbf16>, vector<288x8xf32> -> vector<288x8xf32>
    %18 = arith.addf %12, %17 : vector<288x8xf32>
    %19 = vector.extract_strided_slice %1 {offsets = [18, 0], sizes = [288, 4], strides = [1, 1]} : vector<328x4xf32> to vector<288x4xf32>
    %20 = arith.truncf %19 : vector<288x4xf32> to vector<288x4xbf16>
    %c3 = arith.constant 3 : index
    %c0_10 = arith.constant 0 : index
    %c0_11 = arith.constant 0 : index
    %21 = vector.load %arg2[%c3, %c0_10, %c0_11] : memref<9x4x8xbf16, #tpu.memory_space<vmem>>, vector<1x4x8xbf16>
    %22 = vector.shape_cast %21 : vector<1x4x8xbf16> to vector<4x8xbf16>
    %cst_12 = arith.constant dense<0.000000e+00> : vector<288x8xf32>
    %23 = tpu.matmul %20, %22, %cst_12 {dimension_numbers = #tpu.dot_dimension_numbers<[1], [0], [0], [1], [0, 0, 1, 1], [], []>} : vector<288x4xbf16>, vector<4x8xbf16>, vector<288x8xf32> -> vector<288x8xf32>
    %24 = arith.addf %18, %23 : vector<288x8xf32>
    %25 = vector.extract_strided_slice %1 {offsets = [19, 0], sizes = [288, 4], strides = [1, 1]} : vector<328x4xf32> to vector<288x4xf32>
    %26 = arith.truncf %25 : vector<288x4xf32> to vector<288x4xbf16>
    %c4 = arith.constant 4 : index
    %c0_13 = arith.constant 0 : index
    %c0_14 = arith.constant 0 : index
    %27 = vector.load %arg2[%c4, %c0_13, %c0_14] : memref<9x4x8xbf16, #tpu.memory_space<vmem>>, vector<1x4x8xbf16>
    %28 = vector.shape_cast %27 : vector<1x4x8xbf16> to vector<4x8xbf16>
    %cst_15 = arith.constant dense<0.000000e+00> : vector<288x8xf32>
    %29 = tpu.matmul %26, %28, %cst_15 {dimension_numbers = #tpu.dot_dimension_numbers<[1], [0], [0], [1], [0, 0, 1, 1], [], []>} : vector<288x4xbf16>, vector<4x8xbf16>, vector<288x8xf32> -> vector<288x8xf32>
    %30 = arith.addf %24, %29 : vector<288x8xf32>
    %31 = vector.extract_strided_slice %1 {offsets = [20, 0], sizes = [288, 4], strides = [1, 1]} : vector<328x4xf32> to vector<288x4xf32>
    %32 = arith.truncf %31 : vector<288x4xf32> to vector<288x4xbf16>
    %c5 = arith.constant 5 : index
    %c0_16 = arith.constant 0 : index
    %c0_17 = arith.constant 0 : index
    %33 = vector.load %arg2[%c5, %c0_16, %c0_17] : memref<9x4x8xbf16, #tpu.memory_space<vmem>>, vector<1x4x8xbf16>
    %34 = vector.shape_cast %33 : vector<1x4x8xbf16> to vector<4x8xbf16>
    %cst_18 = arith.constant dense<0.000000e+00> : vector<288x8xf32>
    %35 = tpu.matmul %32, %34, %cst_18 {dimension_numbers = #tpu.dot_dimension_numbers<[1], [0], [0], [1], [0, 0, 1, 1], [], []>} : vector<288x4xbf16>, vector<4x8xbf16>, vector<288x8xf32> -> vector<288x8xf32>
    %36 = arith.addf %30, %35 : vector<288x8xf32>
    %37 = vector.extract_strided_slice %1 {offsets = [36, 0], sizes = [288, 4], strides = [1, 1]} : vector<328x4xf32> to vector<288x4xf32>
    %38 = arith.truncf %37 : vector<288x4xf32> to vector<288x4xbf16>
    %c6 = arith.constant 6 : index
    %c0_19 = arith.constant 0 : index
    %c0_20 = arith.constant 0 : index
    %39 = vector.load %arg2[%c6, %c0_19, %c0_20] : memref<9x4x8xbf16, #tpu.memory_space<vmem>>, vector<1x4x8xbf16>
    %40 = vector.shape_cast %39 : vector<1x4x8xbf16> to vector<4x8xbf16>
    %cst_21 = arith.constant dense<0.000000e+00> : vector<288x8xf32>
    %41 = tpu.matmul %38, %40, %cst_21 {dimension_numbers = #tpu.dot_dimension_numbers<[1], [0], [0], [1], [0, 0, 1, 1], [], []>} : vector<288x4xbf16>, vector<4x8xbf16>, vector<288x8xf32> -> vector<288x8xf32>
    %42 = arith.addf %36, %41 : vector<288x8xf32>
    %43 = vector.extract_strided_slice %1 {offsets = [37, 0], sizes = [288, 4], strides = [1, 1]} : vector<328x4xf32> to vector<288x4xf32>
    %44 = arith.truncf %43 : vector<288x4xf32> to vector<288x4xbf16>
    %c7 = arith.constant 7 : index
    %c0_22 = arith.constant 0 : index
    %c0_23 = arith.constant 0 : index
    %45 = vector.load %arg2[%c7, %c0_22, %c0_23] : memref<9x4x8xbf16, #tpu.memory_space<vmem>>, vector<1x4x8xbf16>
    %46 = vector.shape_cast %45 : vector<1x4x8xbf16> to vector<4x8xbf16>
    %cst_24 = arith.constant dense<0.000000e+00> : vector<288x8xf32>
    %47 = tpu.matmul %44, %46, %cst_24 {dimension_numbers = #tpu.dot_dimension_numbers<[1], [0], [0], [1], [0, 0, 1, 1], [], []>} : vector<288x4xbf16>, vector<4x8xbf16>, vector<288x8xf32> -> vector<288x8xf32>
    %48 = arith.addf %42, %47 : vector<288x8xf32>
    %49 = vector.extract_strided_slice %1 {offsets = [38, 0], sizes = [288, 4], strides = [1, 1]} : vector<328x4xf32> to vector<288x4xf32>
    %50 = arith.truncf %49 : vector<288x4xf32> to vector<288x4xbf16>
    %c8 = arith.constant 8 : index
    %c0_25 = arith.constant 0 : index
    %c0_26 = arith.constant 0 : index
    %51 = vector.load %arg2[%c8, %c0_25, %c0_26] : memref<9x4x8xbf16, #tpu.memory_space<vmem>>, vector<1x4x8xbf16>
    %52 = vector.shape_cast %51 : vector<1x4x8xbf16> to vector<4x8xbf16>
    %cst_27 = arith.constant dense<0.000000e+00> : vector<288x8xf32>
    %53 = tpu.matmul %50, %52, %cst_27 {dimension_numbers = #tpu.dot_dimension_numbers<[1], [0], [0], [1], [0, 0, 1, 1], [], []>} : vector<288x4xbf16>, vector<4x8xbf16>, vector<288x8xf32> -> vector<288x8xf32>
    %54 = arith.addf %48, %53 : vector<288x8xf32>
    %c0_28 = arith.constant 0 : index
    %c0_29 = arith.constant 0 : index
    %55 = vector.load %arg3[%c0_28, %c0_29] : memref<1x8xf32, #tpu.memory_space<vmem>>, vector<1x8xf32>
    %56 = vector.broadcast %55 : vector<1x8xf32> to vector<288x8xf32>
    %57 = arith.mulf %54, %56 : vector<288x8xf32>
    %c0_30 = arith.constant 0 : index
    %c0_31 = arith.constant 0 : index
    %58 = vector.load %arg4[%c0_30, %c0_31] : memref<1x8xf32, #tpu.memory_space<vmem>>, vector<1x8xf32>
    %59 = vector.broadcast %58 : vector<1x8xf32> to vector<288x8xf32>
    %60 = arith.addf %57, %59 : vector<288x8xf32>
    %cst_32 = arith.constant 0.000000e+00 : f32
    %61 = vector.broadcast %cst_32 : f32 to vector<288x8xf32>
    %62 = arith.cmpf oge, %60, %61 : vector<288x8xf32>
    %cst_33 = arith.constant 1.000000e-01 : f32
    %63 = vector.broadcast %cst_33 : f32 to vector<288x8xf32>
    %64 = arith.mulf %63, %60 : vector<288x8xf32>
    %65 = arith.select %62, %60, %64 : vector<288x8xi1>, vector<288x8xf32>
    %66 = arith.truncf %65 : vector<288x8xf32> to vector<288x8xbf16>
    %c0_34 = arith.constant 0 : index
    %c0_35 = arith.constant 0 : index
    %67 = vector.load %arg5[%c0_34, %c0_35] : memref<288x8xbf16, #tpu.memory_space<vmem>>, vector<288x8xbf16>
    tpu.vector_store %arg5[%c0_34, %c0_35], %66 {strides = array<i32>} : memref<288x8xbf16, #tpu.memory_space<vmem>>, vector<288x8xbf16>,
    return
  }
  func.func @transform_0(%arg0: i32) -> (i32, i32) {
    %c0_i32 = arith.constant 0 : i32
    %c0_i32_0 = arith.constant 0 : i32
    return %arg0, %c0_i32 : i32, i32
  }
  func.func @transform_1(%arg0: i32) -> (i32, i32, i32) {
    %c0_i32 = arith.constant 0 : i32
    %c0_i32_0 = arith.constant 0 : i32
    %c0_i32_1 = arith.constant 0 : i32
    %c0_i32_2 = arith.constant 0 : i32
    return %c0_i32, %c0_i32_0, %c0_i32_1 : i32, i32, i32
  }
  func.func @transform_2(%arg0: i32) -> (i32, i32) {
    %c0_i32 = arith.constant 0 : i32
    %c0_i32_0 = arith.constant 0 : i32
    %c0_i32_1 = arith.constant 0 : i32
    return %c0_i32, %c0_i32_0 : i32, i32
  }
  func.func @transform_3(%arg0: i32) -> (i32, i32) {
    %c0_i32 = arith.constant 0 : i32
    %c0_i32_0 = arith.constant 0 : i32
    %c0_i32_1 = arith.constant 0 : i32
    return %c0_i32, %c0_i32_0 : i32, i32
  }
  func.func @transform_4(%arg0: i32) -> (i32, i32) {
    %c0_i32 = arith.constant 0 : i32
    %c0_i32_0 = arith.constant 0 : i32
    return %arg0, %c0_i32 : i32, i32
  }
}

module attributes {stable_mosaic.version = 11 : i64} {
  func.func @_conv_shortcut_kernel(%arg0: i32, %arg1: memref<104x8xbf16, #tpu.memory_space<vmem>>, %arg2: memref<9x8x8xbf16, #tpu.memory_space<vmem>>, %arg3: memref<80x4xbf16, #tpu.memory_space<vmem>>, %arg4: memref<4x8xbf16, #tpu.memory_space<vmem>>, %arg5: memref<80x8xf32, #tpu.memory_space<vmem>>) attributes {dimension_semantics = [#tpu.dimension_semantics<parallel>], iteration_bounds = array<i64: 2>, scalar_prefetch = 0 : i64, scratch_operands = 0 : i64, tpu.core_type = #tpu.core_type<tc>, window_params = [{transform_indices = @transform_0, window_bounds = array<i64: 104, 8>}, {pipeline_mode = #tpu.pipeline_mode<synchronous>, transform_indices = @transform_1, window_bounds = array<i64: 9, 8, 8>}, {transform_indices = @transform_2, window_bounds = array<i64: 80, 4>}, {pipeline_mode = #tpu.pipeline_mode<synchronous>, transform_indices = @transform_3, window_bounds = array<i64: 4, 8>}, {transform_indices = @transform_4, window_bounds = array<i64: 80, 8>}]} {
    %c0 = arith.constant 0 : index
    %c0_0 = arith.constant 0 : index
    %0 = vector.load %arg1[%c0, %c0_0] : memref<104x8xbf16, #tpu.memory_space<vmem>>, vector<104x8xbf16>
    %1 = arith.extf %0 : vector<104x8xbf16> to vector<104x8xf32>
    %2 = vector.extract_strided_slice %1 {offsets = [0, 0], sizes = [80, 8], strides = [1, 1]} : vector<104x8xf32> to vector<80x8xf32>
    %3 = arith.truncf %2 : vector<80x8xf32> to vector<80x8xbf16>
    %c0_1 = arith.constant 0 : index
    %c0_2 = arith.constant 0 : index
    %c0_3 = arith.constant 0 : index
    %4 = vector.load %arg2[%c0_1, %c0_2, %c0_3] : memref<9x8x8xbf16, #tpu.memory_space<vmem>>, vector<1x8x8xbf16>
    %5 = vector.shape_cast %4 : vector<1x8x8xbf16> to vector<8x8xbf16>
    %cst = arith.constant dense<0.000000e+00> : vector<80x8xf32>
    %6 = tpu.matmul %3, %5, %cst {dimension_numbers = #tpu.dot_dimension_numbers<[1], [0], [0], [1], [0, 0, 1, 1], [], []>} : vector<80x8xbf16>, vector<8x8xbf16>, vector<80x8xf32> -> vector<80x8xf32>
    %7 = vector.extract_strided_slice %1 {offsets = [1, 0], sizes = [80, 8], strides = [1, 1]} : vector<104x8xf32> to vector<80x8xf32>
    %8 = arith.truncf %7 : vector<80x8xf32> to vector<80x8xbf16>
    %c1 = arith.constant 1 : index
    %c0_4 = arith.constant 0 : index
    %c0_5 = arith.constant 0 : index
    %9 = vector.load %arg2[%c1, %c0_4, %c0_5] : memref<9x8x8xbf16, #tpu.memory_space<vmem>>, vector<1x8x8xbf16>
    %10 = vector.shape_cast %9 : vector<1x8x8xbf16> to vector<8x8xbf16>
    %cst_6 = arith.constant dense<0.000000e+00> : vector<80x8xf32>
    %11 = tpu.matmul %8, %10, %cst_6 {dimension_numbers = #tpu.dot_dimension_numbers<[1], [0], [0], [1], [0, 0, 1, 1], [], []>} : vector<80x8xbf16>, vector<8x8xbf16>, vector<80x8xf32> -> vector<80x8xf32>
    %12 = arith.addf %6, %11 : vector<80x8xf32>
    %13 = vector.extract_strided_slice %1 {offsets = [2, 0], sizes = [80, 8], strides = [1, 1]} : vector<104x8xf32> to vector<80x8xf32>
    %14 = arith.truncf %13 : vector<80x8xf32> to vector<80x8xbf16>
    %c2 = arith.constant 2 : index
    %c0_7 = arith.constant 0 : index
    %c0_8 = arith.constant 0 : index
    %15 = vector.load %arg2[%c2, %c0_7, %c0_8] : memref<9x8x8xbf16, #tpu.memory_space<vmem>>, vector<1x8x8xbf16>
    %16 = vector.shape_cast %15 : vector<1x8x8xbf16> to vector<8x8xbf16>
    %cst_9 = arith.constant dense<0.000000e+00> : vector<80x8xf32>
    %17 = tpu.matmul %14, %16, %cst_9 {dimension_numbers = #tpu.dot_dimension_numbers<[1], [0], [0], [1], [0, 0, 1, 1], [], []>} : vector<80x8xbf16>, vector<8x8xbf16>, vector<80x8xf32> -> vector<80x8xf32>
    %18 = arith.addf %12, %17 : vector<80x8xf32>
    %19 = vector.extract_strided_slice %1 {offsets = [10, 0], sizes = [80, 8], strides = [1, 1]} : vector<104x8xf32> to vector<80x8xf32>
    %20 = arith.truncf %19 : vector<80x8xf32> to vector<80x8xbf16>
    %c3 = arith.constant 3 : index
    %c0_10 = arith.constant 0 : index
    %c0_11 = arith.constant 0 : index
    %21 = vector.load %arg2[%c3, %c0_10, %c0_11] : memref<9x8x8xbf16, #tpu.memory_space<vmem>>, vector<1x8x8xbf16>
    %22 = vector.shape_cast %21 : vector<1x8x8xbf16> to vector<8x8xbf16>
    %cst_12 = arith.constant dense<0.000000e+00> : vector<80x8xf32>
    %23 = tpu.matmul %20, %22, %cst_12 {dimension_numbers = #tpu.dot_dimension_numbers<[1], [0], [0], [1], [0, 0, 1, 1], [], []>} : vector<80x8xbf16>, vector<8x8xbf16>, vector<80x8xf32> -> vector<80x8xf32>
    %24 = arith.addf %18, %23 : vector<80x8xf32>
    %25 = vector.extract_strided_slice %1 {offsets = [11, 0], sizes = [80, 8], strides = [1, 1]} : vector<104x8xf32> to vector<80x8xf32>
    %26 = arith.truncf %25 : vector<80x8xf32> to vector<80x8xbf16>
    %c4 = arith.constant 4 : index
    %c0_13 = arith.constant 0 : index
    %c0_14 = arith.constant 0 : index
    %27 = vector.load %arg2[%c4, %c0_13, %c0_14] : memref<9x8x8xbf16, #tpu.memory_space<vmem>>, vector<1x8x8xbf16>
    %28 = vector.shape_cast %27 : vector<1x8x8xbf16> to vector<8x8xbf16>
    %cst_15 = arith.constant dense<0.000000e+00> : vector<80x8xf32>
    %29 = tpu.matmul %26, %28, %cst_15 {dimension_numbers = #tpu.dot_dimension_numbers<[1], [0], [0], [1], [0, 0, 1, 1], [], []>} : vector<80x8xbf16>, vector<8x8xbf16>, vector<80x8xf32> -> vector<80x8xf32>
    %30 = arith.addf %24, %29 : vector<80x8xf32>
    %31 = vector.extract_strided_slice %1 {offsets = [12, 0], sizes = [80, 8], strides = [1, 1]} : vector<104x8xf32> to vector<80x8xf32>
    %32 = arith.truncf %31 : vector<80x8xf32> to vector<80x8xbf16>
    %c5 = arith.constant 5 : index
    %c0_16 = arith.constant 0 : index
    %c0_17 = arith.constant 0 : index
    %33 = vector.load %arg2[%c5, %c0_16, %c0_17] : memref<9x8x8xbf16, #tpu.memory_space<vmem>>, vector<1x8x8xbf16>
    %34 = vector.shape_cast %33 : vector<1x8x8xbf16> to vector<8x8xbf16>
    %cst_18 = arith.constant dense<0.000000e+00> : vector<80x8xf32>
    %35 = tpu.matmul %32, %34, %cst_18 {dimension_numbers = #tpu.dot_dimension_numbers<[1], [0], [0], [1], [0, 0, 1, 1], [], []>} : vector<80x8xbf16>, vector<8x8xbf16>, vector<80x8xf32> -> vector<80x8xf32>
    %36 = arith.addf %30, %35 : vector<80x8xf32>
    %37 = vector.extract_strided_slice %1 {offsets = [20, 0], sizes = [80, 8], strides = [1, 1]} : vector<104x8xf32> to vector<80x8xf32>
    %38 = arith.truncf %37 : vector<80x8xf32> to vector<80x8xbf16>
    %c6 = arith.constant 6 : index
    %c0_19 = arith.constant 0 : index
    %c0_20 = arith.constant 0 : index
    %39 = vector.load %arg2[%c6, %c0_19, %c0_20] : memref<9x8x8xbf16, #tpu.memory_space<vmem>>, vector<1x8x8xbf16>
    %40 = vector.shape_cast %39 : vector<1x8x8xbf16> to vector<8x8xbf16>
    %cst_21 = arith.constant dense<0.000000e+00> : vector<80x8xf32>
    %41 = tpu.matmul %38, %40, %cst_21 {dimension_numbers = #tpu.dot_dimension_numbers<[1], [0], [0], [1], [0, 0, 1, 1], [], []>} : vector<80x8xbf16>, vector<8x8xbf16>, vector<80x8xf32> -> vector<80x8xf32>
    %42 = arith.addf %36, %41 : vector<80x8xf32>
    %43 = vector.extract_strided_slice %1 {offsets = [21, 0], sizes = [80, 8], strides = [1, 1]} : vector<104x8xf32> to vector<80x8xf32>
    %44 = arith.truncf %43 : vector<80x8xf32> to vector<80x8xbf16>
    %c7 = arith.constant 7 : index
    %c0_22 = arith.constant 0 : index
    %c0_23 = arith.constant 0 : index
    %45 = vector.load %arg2[%c7, %c0_22, %c0_23] : memref<9x8x8xbf16, #tpu.memory_space<vmem>>, vector<1x8x8xbf16>
    %46 = vector.shape_cast %45 : vector<1x8x8xbf16> to vector<8x8xbf16>
    %cst_24 = arith.constant dense<0.000000e+00> : vector<80x8xf32>
    %47 = tpu.matmul %44, %46, %cst_24 {dimension_numbers = #tpu.dot_dimension_numbers<[1], [0], [0], [1], [0, 0, 1, 1], [], []>} : vector<80x8xbf16>, vector<8x8xbf16>, vector<80x8xf32> -> vector<80x8xf32>
    %48 = arith.addf %42, %47 : vector<80x8xf32>
    %49 = vector.extract_strided_slice %1 {offsets = [22, 0], sizes = [80, 8], strides = [1, 1]} : vector<104x8xf32> to vector<80x8xf32>
    %50 = arith.truncf %49 : vector<80x8xf32> to vector<80x8xbf16>
    %c8 = arith.constant 8 : index
    %c0_25 = arith.constant 0 : index
    %c0_26 = arith.constant 0 : index
    %51 = vector.load %arg2[%c8, %c0_25, %c0_26] : memref<9x8x8xbf16, #tpu.memory_space<vmem>>, vector<1x8x8xbf16>
    %52 = vector.shape_cast %51 : vector<1x8x8xbf16> to vector<8x8xbf16>
    %cst_27 = arith.constant dense<0.000000e+00> : vector<80x8xf32>
    %53 = tpu.matmul %50, %52, %cst_27 {dimension_numbers = #tpu.dot_dimension_numbers<[1], [0], [0], [1], [0, 0, 1, 1], [], []>} : vector<80x8xbf16>, vector<8x8xbf16>, vector<80x8xf32> -> vector<80x8xf32>
    %54 = arith.addf %48, %53 : vector<80x8xf32>
    %c0_28 = arith.constant 0 : index
    %c0_29 = arith.constant 0 : index
    %55 = vector.load %arg3[%c0_28, %c0_29] : memref<80x4xbf16, #tpu.memory_space<vmem>>, vector<80x4xbf16>
    %c0_30 = arith.constant 0 : index
    %c0_31 = arith.constant 0 : index
    %56 = vector.load %arg4[%c0_30, %c0_31] : memref<4x8xbf16, #tpu.memory_space<vmem>>, vector<4x8xbf16>
    %cst_32 = arith.constant dense<0.000000e+00> : vector<80x8xf32>
    %57 = tpu.matmul %55, %56, %cst_32 {dimension_numbers = #tpu.dot_dimension_numbers<[1], [0], [0], [1], [0, 0, 1, 1], [], []>} : vector<80x4xbf16>, vector<4x8xbf16>, vector<80x8xf32> -> vector<80x8xf32>
    %58 = arith.addf %54, %57 : vector<80x8xf32>
    %c0_33 = arith.constant 0 : index
    %c0_34 = arith.constant 0 : index
    %59 = vector.load %arg5[%c0_33, %c0_34] : memref<80x8xf32, #tpu.memory_space<vmem>>, vector<80x8xf32>
    tpu.vector_store %arg5[%c0_33, %c0_34], %58 {strides = array<i32>} : memref<80x8xf32, #tpu.memory_space<vmem>>, vector<80x8xf32>,
    return
  }
  func.func @transform_0(%arg0: i32) -> (i32, i32) {
    %c0_i32 = arith.constant 0 : i32
    %c0_i32_0 = arith.constant 0 : i32
    return %arg0, %c0_i32 : i32, i32
  }
  func.func @transform_1(%arg0: i32) -> (i32, i32, i32) {
    %c0_i32 = arith.constant 0 : i32
    %c0_i32_0 = arith.constant 0 : i32
    %c0_i32_1 = arith.constant 0 : i32
    %c0_i32_2 = arith.constant 0 : i32
    return %c0_i32, %c0_i32_0, %c0_i32_1 : i32, i32, i32
  }
  func.func @transform_2(%arg0: i32) -> (i32, i32) {
    %c0_i32 = arith.constant 0 : i32
    %c0_i32_0 = arith.constant 0 : i32
    return %arg0, %c0_i32 : i32, i32
  }
  func.func @transform_3(%arg0: i32) -> (i32, i32) {
    %c0_i32 = arith.constant 0 : i32
    %c0_i32_0 = arith.constant 0 : i32
    %c0_i32_1 = arith.constant 0 : i32
    return %c0_i32, %c0_i32_0 : i32, i32
  }
  func.func @transform_4(%arg0: i32) -> (i32, i32) {
    %c0_i32 = arith.constant 0 : i32
    %c0_i32_0 = arith.constant 0 : i32
    return %arg0, %c0_i32 : i32, i32
  }
}

</mosaic_0001>

<bundles_post_ra>
// kernel: basic_block_forward.3
= control target key start
LH: loop header
LB: loop body
LE: loop exit
PB: predicated region body
PF: predicated region fallthrough
CT: control target
= control target key end

     0   :  { %s2190_s15 = smov 0   ;;  %s2665_s0 = inlined_call_operand.vmem [shape: bf16[208,8], index: 0, kind: input, shape index: {}]   ;;  %s2666_s1 = inlined_call_operand.vmem [shape: bf16[9,8,8], index: 1, kind: input, shape index: {}]   ;;  %s2667_s2 = inlined_call_operand.vmem [shape: bf16[160,4], index: 2, kind: input, shape index: {}]   ;;  %s2668_s3 = inlined_call_operand.vmem [shape: bf16[4,8], index: 3, kind: input, shape index: {}]   ;;  %s2669_s4 = inlined_call_operand.vmem [shape: f32[160,8], index: 4, kind: output, shape index: {}]  }
   0x1 LB: > { %s1589_s16 = sadd.s32 4294967295, %s2161_s15   ;;  %p1593_p0 = scmp.ge.s32.totalorder %s2161_s15, 1  ;;  %s2161_s15 = sphi %s2190_s15, %s14_s15  }
   0x2   : > { %p174_p1 = scmp.lt.s32.totalorder %s2161_s15, 3 }
   0x4   : > { %p175_p2 = pnand %p1593_p0, %p174_p1 }
   0x5   : > { %vm320_vm0 = vcmask (!%p175_p2), 1043456   ;;  %v1638_v0 = vld [vmem:[%s2666_s1 + $0x14] sm:$0xf] (!%p175_p2)  ;;  %s205_s19 = smul.u32 (!%p175_p2), 13, %s1589_s16  ;;  %v2163_v1 = vmov (!%p175_p2), 0.0   ;;  %vm2164_vm1 = vmmov (!%p175_p2), 0  }
   0x6   : > { %178 = sbr.rel (%p175_p2) target bundleno = 436 (0x1b4), region = 36  ;;  %1846 = vmatprep.subr.bf16.mxu0 (!%p175_p2), %v2163_v1  ;;  %v917_v2 = vsel (!%p175_p2), %vm320_vm0, %v1638_v0, 0  ;;  %1736 = vmatprep.subr.bf16.mxu1 (!%p175_p2), %v2163_v1  ;;  %v1603_v3 = vld [vmem:[%s2666_s1 + $0x4] sm:$0xf] (!%p175_p2)  ;;  %vm304_vm2 = vcmask (!%p175_p2), 64512   ;;  %vm889_vm3 = vcmask (!%p175_p2), 1045504  }
   0x7   : > { %1847 = vmatpush3.bf16.msra.mxu0 (!%p175_p2), %v917_v2  ;;  %1848 = vmatprep.mubr.msk.bf16.mxu0 (!%p175_p2), %vm2164_vm1, %v2163_v1  ;;  %v322_v4 = vsel (!%p175_p2), %vm320_vm0, %v1603_v3, 0  ;;  %p206_p3 = scmp.lt.s32.totalorder (!%p175_p2), %s205_s19, 25  ;;  %v1646_v15 = vld [vmem:[%s2666_s1 + $0x18] sm:$0xf] (!%p175_p2)  ;;  %v255_v30 = vld [vmem:[%s2666_s1] sm:$0xf] (!%p175_p2) }
   0x8   : > { %1737 = vmatpush3.bf16.msra.mxu1 (!%p175_p2), %v322_v4  ;;  %1738 = vmatprep.mubr.msk.bf16.mxu1 (!%p175_p2), %vm2164_vm1, %v2163_v1  ;;  %v1035_v24 = vsel (!%p175_p2), %vm320_vm0, %v1646_v15, 0  ;;  %vm259_vm4 = vsmask.f32 (!%p175_p2), 7424  ;;  %v408_v36 = vsel (!%p175_p2), %vm320_vm0, %v255_v30, 0  ;;  %vm1122_vm5 = vsmask.f32 (!%p175_p2), 5376 }
   0x9   : > { %1758 = vmatprep.subr.bf16.mxu1 (!%p175_p2), %v2163_v1  ;;  %1868 = vmatprep.subr.bf16.mxu0 (!%p175_p2), %v2163_v1  ;;  %vm491_vm6 = vcmask (!%p175_p2), 1046528   ;;  %vm1259_vm7 = vcmask (!%p175_p2), 1044480   ;;  %s211_s30 = smul.u32 (!%p175_p2), 10, %s1589_s16  ;;  %vm732_vm8 = vsmask.f32 (!%p175_p2), 6400  ;;  %vm1424_vm9 = vcmask (!%p175_p2), 1041408  }
   0xa   : > { %vm1408_vm10 = vcmask (!%p175_p2), 31744  }
   0xb   : > { %p212_p4 = scmp.lt.s32.totalorder (!%p175_p2), %s211_s30, 19 }
   0xd   : > { %s2671_s19 = smov (!%p206_p3, %s205_s19), 25  ;;  %s2673_s30 = smov (!%p212_p4, %s211_s30), 19 }
   0xe   : > { %s1594_s22 = sshll.u32 %s2671_s19, 2  ;;  %s1595_s5 = sshll.u32 %s2673_s30, 2 }
   0xf   : > { %s2219_s25 = scalar_lea.vmem %s2665_s0, %s1594_s22  ;;  %s2395_s8 = scalar_lea.vmem %s2667_s2, %s1595_s5 }
  0x10   : > { %v225_v5 = vld [vmem:[%s2219_s25 + $0x4] sm:$0xf]  ;;  %v226_v6 = vld [vmem:[%s2219_s25 + $0x8] sm:$0xf]  ;;  %v227_v7 = vld [vmem:[%s2219_s25 + $0xc] sm:$0xf] }
  0x11   : > { %v228_v8 = vld [vmem:[%s2219_s25 + $0x10] sm:$0xf]  ;;  %v2225_v9 = vcombine.low %v226_v6, %v227_v7  ;;  %v2227_v10 = vcombine.low %v225_v5, %v226_v6  ;;  %v224_v11 = vld [vmem:[%s2219_s25] sm:$0xf]  ;;  %v229_v12 = vld [vmem:[%s2219_s25 + $0x14] sm:$0xf] }
  0x12   : > { %v2231_v13 = vcombine.low %v227_v7, %v228_v8  ;;  %v2233_v14 = vcombine.low %v224_v11, %v225_v5  ;;  %v230_v16 = vld [vmem:[%s2219_s25 + $0x18] sm:$0xf]  ;;  %v2241_v19 = vcombine.low %v228_v8, %v229_v12  ;;  %v231_v25 = vld [vmem:[%s2219_s25 + $0x1c] sm:$0xf]  ;;  %v232_v26 = vld [vmem:[%s2219_s25 + $0x20] sm:$0xf] }
  0x13   : > { %v890_v17 = vrot.slane %v2227_v10, 2  ;;  %v268_v18 = vshll.u32 %v2225_v9, 16  ;;  %v2246_v23 = vcombine.low %v229_v12, %v230_v16  ;;  %v272_v31 = vshrl.u32 %v2225_v9, 16  ;;  %v233_v42 = vld [vmem:[%s2219_s25 + $0x24] sm:$0xf]  ;;  %s1596_s22 = sshll.u32 %s2673_s30, 3 }
  0x14   : > { %v891_v20 = vrot.slane %v2231_v13, 2  ;;  %v261_v21 = vshrl.u32 %v2233_v14, 16  ;;  %v263_v22 = vshll.u32 %v2233_v14, 16  ;;  %v276_v32 = vshll.u32 %v2241_v19, 16  ;;  %v234_v45 = vld [vmem:[%s2219_s25 + $0x28] sm:$0xf] }
  0x15   : > { %v270_v29 = vrot.slane %v268_v18, 1  ;;  %v893_v34 = vrot.slane %v2246_v23, 2  ;;  %v2261_v35 = vcombine.low %v231_v25, %v232_v26  ;;  %v2267_v40 = vcombine.low %v230_v16, %v231_v25  ;;  %v2280_v51 = vld [vmem:[%s2219_s25 + $0x30] ss:$0 sps:$4 sm:$0xff]   ;;  %v235_v52 = vld [vmem:[%s2219_s25 + $0x2c] sm:$0xf]  ;;  %s2640_s25 = scalar_lea.vmem %s2669_s4, %s1596_s22 }
  0x16   : > { %v892_v27 = vsel %vm889_vm3, %v890_v17, %v891_v20  ;;  %v265_v28 = vrot.slane %v263_v22, 1  ;;  %v278_v39 = vrot.slane %v276_v32, 1  ;;  %v280_v41 = vshrl.u32 %v2241_v19, 16 }
  0x17   : > { %1849 = vmatmul.mubr.msk.bf16.vlgmr.msra.gmra.mrb[0].mxu0 %vm304_vm2, %v892_v27  ;;  %v274_v38 = vor.u32 %v272_v31, %v270_v29  ;;  %v894_v43 = vsel %vm889_vm3, %v891_v20, %v893_v34  ;;  %v895_v44 = vrot.slane %v2261_v35, 2  ;;  %v2276_v46 = vcombine.low %v232_v26, %v233_v42 }
  0x18   : > { %v266_v33 = vor.u32 %v265_v28, %v261_v21  ;;  %1869 = vmatpush3.bf16.msra.mxu0 %v1035_v24  ;;  %1852 = vmatprep.mubr.msk.bf16.mxu0 %vm2164_vm1, %v2163_v1  ;;  %v1124_v47 = vrot.slane %v268_v18, 3  ;;  %v1123_v48 = vrot.slane %v272_v31, 2  ;;  %v1127_v49 = vrot.slane %v276_v32, 3 }
  0x19   : > { %1890 = vmatprep.subr.bf16.mxu0 %v2163_v1  ;;  %v1126_v50 = vrot.slane %v280_v41, 2  ;;  %v279_v53 = vsel %vm259_vm4, %v274_v38, %v278_v39  ;;  %v284_v54 = vshll.u32 %v2267_v40, 16  ;;  %v2286_v55 = vcombine.low %v233_v42, %v234_v45 }
  0x1a   : > { %v271_v37 = vsel %vm259_vm4, %v266_v33, %v270_v29  ;;  %v2288_v56 = vcombine.low %v234_v45, %v235_v52  ;;  %v896_v57 = vsel %vm889_vm3, %v893_v34, %v895_v44  ;;  %v282_v58 = vor.u32 %v280_v41, %v278_v39 }
  0x1b   : > { %1739 = vmatmul.mubr.msk.bf16.vlgmr.msra.gmra.mrb[0].mxu1 %vm304_vm2, %v271_v37  ;;  %v288_v59 = vshrl.u32 %v2267_v40, 16  ;;  %v292_v60 = vshll.u32 %v2276_v46, 16  ;;  %v1017_v62 = vrot.slane %v2280_v51, 2  ;;  %v1125_v63 = vor.u32 %v1124_v47, %v1123_v48 }
  0x1c   : > { %1759 = vmatpush3.bf16.msra.mxu1 %v408_v36  ;;  %1742 = vmatprep.mubr.msk.bf16.mxu1 %vm2164_vm1, %v2163_v1  ;;  %v1015_v61 = vrot.slane %v2288_v56, 2  ;;  %v1128_v0 = vor.u32 %v1127_v49, %v1126_v50  ;;  %v296_v2 = vshrl.u32 %v2276_v46, 16  ;;  %v492_v3 = vrot.slane %v2233_v14, 1 }
  0x1d   : > { %1780 = vmatprep.subr.bf16.mxu1 %v2163_v1  ;;  %v493_v4 = vrot.slane %v2225_v9, 1  ;;  %v1130_v5 = vrot.slane %v288_v59, 2  ;;  %v286_v6 = vrot.slane %v284_v54, 1  ;;  %v1131_v11 = vrot.slane %v284_v54, 3 }
  0x1e   : > { %v2304_v7 = vsel %vm889_vm3, %v1015_v61, %v1017_v62  ;;  %v2307_v8 = vsel %vm1122_vm5, %v1125_v63, %v1128_v0  ;;  %v495_v15 = vrot.slane %v2241_v19, 1  ;;  %v1134_v16 = vrot.slane %v296_v2, 2 }
  0x1f   : > { %1853 = vmatmul.mubr.msk.bf16.gmra.mrb[4].mxu0 %vm304_vm2, %v894_v43  ;;  %v2312_v12 = vsel %vm491_vm6, %v492_v3, %v493_v4  ;;  %v1135_v17 = vrot.slane %v292_v60, 3  ;;  %v1132_v18 = vor.u32 %v1131_v11, %v1130_v5  ;;  %v287_v24 = vsel %vm259_vm4, %v282_v58, %v286_v6 }
  0x20   : > { %1856 = vmatprep.mubr.msk.bf16.mxu0 %vm2164_vm1, %v2163_v1  ;;  %v2318_v20 = vsel %vm491_vm6, %v493_v4, %v495_v15  ;;  %v897_v25 = vrot.slane %v2286_v55, 2  ;;  %v1260_v27 = vrot.slane %v2225_v9, 3  ;;  %v1261_v28 = vrot.slane %v2241_v19, 3 }
  0x21   : > { %v2320_v21 = vor.u32 %v1135_v17, %v1134_v16  ;;  %v2324_v22 = vsel %vm1122_vm5, %v1128_v0, %v1132_v18  ;;  %v618_v29 = vrot.slane %v2227_v10, 1  ;;  %v619_v30 = vrot.slane %v2231_v13, 1 }
  0x22   : > { %v2339_v31 = vcombine.low %v235_v52, %v235_v52  ;;  %v2341_v32 = vcombine.low %v234_v45, %v234_v45  ;;  %v2346_v33 = vsel %vm1259_vm7, %v1260_v27, %v1261_v28  ;;  %v898_v34 = vsel %vm889_vm3, %v895_v44, %v897_v25 }
  0x23   : > { %1743 = vmatmul.mubr.msk.bf16.gmra.mrb[4].mxu1 %vm304_vm2, %v279_v53  ;;  %v2332_v26 = vsel %vm1122_vm5, %v1132_v18, %v2320_v21  ;;  %v290_v36 = vor.u32 %v288_v59, %v286_v6  ;;  %v294_v37 = vrot.slane %v292_v60, 1  ;;  %v2352_v38 = vsel %vm491_vm6, %v618_v29, %v619_v30 }
  0x24   : > { %1746 = vmatprep.mubr.msk.bf16.mxu1 %vm2164_vm1, %v2163_v1  ;;  %v621_v39 = vrot.slane %v2246_v23, 1  ;;  %v623_v41 = vrot.slane %v2261_v35, 1  ;;  %v1267_v42 = vrot.slane %v2288_v56, 3  ;;  %v625_v43 = vrot.slane %v2286_v55, 1 }
  0x25   : > { %v1269_v44 = vrot.slane %v2280_v51, 3  ;;  %v899_v45 = vrot.slane %v2339_v31, 2  ;;  %v300_v47 = vshll.u32 %v2341_v32, 16  ;;  %v295_v50 = vsel %vm259_vm4, %v290_v36, %v294_v37 }
  0x26   : > { %v2365_v48 = vsel %vm491_vm6, %v619_v30, %v621_v39  ;;  %v2368_v49 = vsel %vm491_vm6, %v621_v39, %v623_v41  ;;  %v2374_v52 = vsel %vm491_vm6, %v623_v41, %v625_v43  ;;  %v627_v54 = vrot.slane %v2339_v31, 1 }
  0x27   : > { %1857 = vmatmul.mubr.msk.bf16.gmra.mrb[8].mxu0 %vm304_vm2, %v896_v57  ;;  %v2379_v53 = vsel %vm1259_vm7, %v1267_v42, %v1269_v44  ;;  %v900_v58 = vsel %vm889_vm3, %v897_v25, %v899_v45  ;;  %v298_v59 = vor.u32 %v296_v2, %v294_v37  ;;  %v302_v60 = vrot.slane %v300_v47, 1 }
  0x28   : > { %1860 = vmatprep.mubr.msk.bf16.mxu0 %vm2164_vm1, %v2163_v1  ;;  %v2385_v57 = vsel %vm491_vm6, %v625_v43, %v627_v54  ;;  %v734_v62 = vshrl.u32 %v2227_v10, 16  ;;  %v737_v63 = vshll.u32 %v2227_v10, 16  ;;  %v742_v0 = vshrl.u32 %v2231_v13, 16 }
  0x29   : > { %v745_v3 = vshll.u32 %v2231_v13, 16  ;;  %v1008_v2 = vrot.slane %v2225_v9, 2  ;;  %v1009_v4 = vrot.slane %v2241_v19, 2  ;;  %v303_v17 = vsel %vm259_vm4, %v298_v59, %v302_v60  ;;  %v1652_v13 = vld [vmem:[%s2666_s1 + $0x1c] sm:$0xf] }
  0x2a   : > { %v736_v5 = vrot.slane %v734_v62, 1  ;;  %v739_v6 = vrot.slane %v737_v63, 2  ;;  %v744_v11 = vrot.slane %v742_v0, 1  ;;  %v751_v27 = vshrl.u32 %v2246_v23, 16 }
  0x2b   : > { %1747 = vmatmul.mubr.msk.bf16.gmra.mrb[8].mxu1 %vm304_vm2, %v287_v24  ;;  %v747_v16 = vrot.slane %v745_v3, 2  ;;  %v1010_v25 = vsel %vm889_vm3, %v1008_v2, %v1009_v4  ;;  %v754_v29 = vshll.u32 %v2246_v23, 16  ;;  %v1172_v30 = vsel %vm320_vm0, %v1652_v13, 0 }
  0x2c   : > { %1750 = vmatprep.mubr.msk.bf16.mxu1 %vm2164_vm1, %v2163_v1  ;;  %v740_v10 = vor.u32 %v739_v6, %v736_v5  ;;  %v753_v36 = vrot.slane %v751_v27, 1  ;;  %v1011_v39 = vrot.slane %v2267_v40, 2  ;;  %v760_v45 = vshrl.u32 %v2261_v35, 16 }
  0x2d   : > { %v748_v18 = vor.u32 %v747_v16, %v744_v11  ;;  %v756_v37 = vrot.slane %v754_v29, 2  ;;  %v763_v47 = vshll.u32 %v2261_v35, 16  ;;  %v769_v60 = vshrl.u32 %v2286_v55, 16 }
  0x2e   : > { %v1012_v44 = vsel %vm889_vm3, %v1009_v4, %v1011_v39  ;;  %v772_v62 = vshll.u32 %v2286_v55, 16  ;;  %v778_v55 = vshrl.u32 %v2339_v31, 16  ;;  %v781_v4 = vshll.u32 %v2339_v31, 16 }
  0x2f   : > { %1861 = vmatmul.mubr.msk.bf16.gmra.mrb[12].mxu0 %vm304_vm2, %v898_v34  ;;  %v2411_v24 = vsel %vm732_vm8, %v740_v10, %v748_v18  ;;  %v1614_v34 = vld [vmem:[%s2666_s1 + $0x8] sm:$0xf]  ;;  %v757_v41 = vor.u32 %v756_v37, %v753_v36  ;;  %v765_v54 = vrot.slane %v763_v47, 2  ;;  %v771_v63 = vrot.slane %v769_v60, 1 }
  0x30   : > { %1864 = vmatprep.mubr.msk.bf16.mxu0 %vm2164_vm1, %v2163_v1  ;;  %v519_v43 = vsel %vm320_vm0, %v1614_v34, 0  ;;  %v774_v0 = vrot.slane %v772_v62, 2  ;;  %v780_v5 = vrot.slane %v778_v55, 1  ;;  %v783_v6 = vrot.slane %v781_v4, 2 }
  0x31   : > { %v2430_v23 = vsel %vm732_vm8, %v748_v18, %v757_v41  ;;  %v1142_v10 = vshll.u32 %v2288_v56, 16  ;;  %v1151_v27 = vshll.u32 %v2280_v51, 16 }
  0x32   : > { %v775_v3 = vor.u32 %v774_v0, %v771_v63  ;;  %v784_v11 = vor.u32 %v783_v6, %v780_v5 }
  0x33   : > { %1751 = vmatmul.mubr.msk.bf16.gmra.mrb[12].mxu1 %vm304_vm2, %v295_v50  ;;  %v762_v50 = vrot.slane %v760_v45, 1  ;;  %v1144_v13 = vrot.slane %v1142_v10, 3 }
  0x34   : > { %1754 = vmatprep.mubr.msk.bf16.mxu1 %vm2164_vm1, %v2163_v1  ;;  %v2473_v16 = vsel %vm732_vm8, %v775_v3, %v784_v11 }
  0x37   : > { %1865 = vmatmul.mubr.msk.bf16.gmra.mrb[16].mxu0 %vm304_vm2, %v900_v58  ;;  %v766_v58 = vor.u32 %v765_v54, %v762_v50 }
  0x38   : > { %1870 = vmatprep.mubr.msk.bf16.mxu0 %vm2164_vm1, %v2163_v1 }
  0x39   : > { %v2445_v59 = vsel %vm732_vm8, %v757_v41, %v766_v58  ;;  %v2458_v2 = vsel %vm732_vm8, %v766_v58, %v775_v3 }
  0x3b   : > { %1755 = vmatmul.mubr.msk.bf16.gmra.mrb[16].mxu1 %vm304_vm2, %v303_v17  ;;  %v1626_v17 = vld [vmem:[%s2666_s1 + $0xc] sm:$0xf] }
  0x3c   : > { %1760 = vmatprep.mubr.msk.bf16.mxu1 %vm2164_vm1, %v2163_v1 }
  0x3f   : > { %1871 = vmatmul.mubr.msk.bf16.vlgmr.msra.gmra.mrb[0].mxu0 %vm304_vm2, %v1010_v25 }
  0x40   : > { %1891 = vmatpush3.bf16.msra.mxu0 %v1172_v30  ;;  %1874 = vmatprep.mubr.msk.bf16.mxu0 %vm2164_vm1, %v2163_v1 }
  0x41   : > { %1912 = vmatprep.subr.bf16.mxu0 %v2163_v1 }
  0x43   : > { %1761 = vmatmul.mubr.msk.bf16.vlgmr.msra.gmra.mrb[0].mxu1 %vm304_vm2, %v2233_v14  ;;  %v1013_v14 = vrot.slane %v2276_v46, 2 }
  0x44   : > { %1781 = vmatpush3.bf16.msra.mxu1 %v519_v43  ;;  %1764 = vmatprep.mubr.msk.bf16.mxu1 %vm2164_vm1, %v2163_v1  ;;  %v1263_v43 = vrot.slane %v2267_v40, 3 }
  0x45   : > { %1802 = vmatprep.subr.bf16.mxu1 %v2163_v1  ;;  %v1014_v35 = vsel %vm889_vm3, %v1011_v39, %v1013_v14  ;;  %v1382_v39 = vld [vmem:[%s2668_s3] sm:$0x3] }
  0x46   : > { %v1426_v41 = vsel %vm1424_vm9, %v1382_v39, 0  ;;  %v1264_v45 = vsel %vm1259_vm7, %v1261_v28, %v1263_v43  ;;  %v2152_v28 = vld [vmem:[%s2395_s8 + $0x10] sm:$0xff]  }
  0x47   : > { %1875 = vmatmul.mubr.msk.bf16.gmra.mrb[4].mxu0 %vm304_vm2, %v1012_v44 }
  0x48   : > { %1878 = vmatprep.mubr.msk.bf16.mxu0 %vm2164_vm1, %v2163_v1 }
  0x4b   : > { %1765 = vmatmul.mubr.msk.bf16.gmra.mrb[4].mxu1 %vm304_vm2, %v2225_v9  ;;  %v1016_v9 = vsel %vm889_vm3, %v1013_v14, %v1015_v61  ;;  %v1658_v61 = vld [vmem:[%s2666_s1 + $0x20] sm:$0xf] }
  0x4c   : > { %1768 = vmatprep.mubr.msk.bf16.mxu1 %vm2164_vm1, %v2163_v1  ;;  %v1287_v31 = vsel %vm320_vm0, %v1658_v61, 0 }
  0x4f   : > { %1879 = vmatmul.mubr.msk.bf16.gmra.mrb[8].mxu0 %vm304_vm2, %v1014_v35 }
  0x50   : > { %1882 = vmatprep.mubr.msk.bf16.mxu0 %vm2164_vm1, %v2163_v1 }
  0x53   : > { %1769 = vmatmul.mubr.msk.bf16.gmra.mrb[8].mxu1 %vm304_vm2, %v2241_v19 }
  0x54   : > { %1772 = vmatprep.mubr.msk.bf16.mxu1 %vm2164_vm1, %v2163_v1 }
  0x57   : > { %1883 = vmatmul.mubr.msk.bf16.gmra.mrb[12].mxu0 %vm304_vm2, %v1016_v9 }
  0x58   : > { %1886 = vmatprep.mubr.msk.bf16.mxu0 %vm2164_vm1, %v2163_v1 }
  0x5b   : > { %1773 = vmatmul.mubr.msk.bf16.gmra.mrb[12].mxu1 %vm304_vm2, %v2267_v40 }
  0x5c   : > { %1776 = vmatprep.mubr.msk.bf16.mxu1 %vm2164_vm1, %v2163_v1 }
  0x5f   : > { %1887 = vmatmul.mubr.msk.bf16.gmra.mrb[16].mxu0 %vm304_vm2, %v2304_v7  ;;  %v645_v7 = vsel %vm320_vm0, %v1626_v17, 0 }
  0x60   : > { %1892 = vmatprep.mubr.msk.bf16.mxu0 %vm2164_vm1, %v2163_v1 }
  0x63   : > { %1777 = vmatmul.mubr.msk.bf16.gmra.mrb[16].mxu1 %vm304_vm2, %v2276_v46 }
  0x64   : > { %1782 = vmatprep.mubr.msk.bf16.mxu1 %vm2164_vm1, %v2163_v1 }
  0x67   : > { %1893 = vmatmul.mubr.msk.bf16.vlgmr.msra.gmra.mrb[0].mxu0 %vm304_vm2, %v2307_v8  ;;  %v1139_v8 = vshrl.u32 %v2288_v56, 16  ;;  %v2151_v56 = vld [vmem:[%s2395_s8 + $0x8] sm:$0xff]  }
  0x68   : > { %1913 = vmatpush3.bf16.msra.mxu0 %v1287_v31  ;;  %1896 = vmatprep.mubr.msk.bf16.mxu0 %vm2164_vm1, %v2163_v1 }
  0x69   : > { %1934 = vmatprep.subr.bf16.mxu0 %v2163_v1  ;;  %v1141_v18 = vrot.slane %v1139_v8, 2 }
  0x6b   : > { %1783 = vmatmul.mubr.msk.bf16.vlgmr.msra.gmra.mrb[0].mxu1 %vm304_vm2, %v2312_v12  ;;  %v497_v12 = vrot.slane %v2267_v40, 1  ;;  %v1145_v25 = vor.u32 %v1144_v13, %v1141_v18  ;;  %v1265_v40 = vrot.slane %v2276_v46, 3 }
  0x6c   : > { %1803 = vmatpush3.bf16.msra.mxu1 %v645_v7  ;;  %1786 = vmatprep.mubr.msk.bf16.mxu1 %vm2164_vm1, %v2163_v1 }
  0x6d   : > { %1824 = vmatprep.subr.bf16.mxu1 %v2163_v1  ;;  %v1146_v29 = vsel %vm1122_vm5, %v2320_v21, %v1145_v25  ;;  %v501_v21 = vrot.slane %v2341_v32, 1  ;;  %v1632_v32 = vld [vmem:[%s2666_s1 + $0x10] sm:$0xf]  ;;  %v1268_v19 = vsel %vm1259_vm7, %v1265_v40, %v1267_v42  ;;  %v2154_v42 = vld [vmem:[%s2395_s8 + $0x20] sm:$0xff]  }
  0x6e   : > { %v802_v44 = vsel %vm320_vm0, %v1632_v32, 0 }
  0x6f   : > { %1897 = vmatmul.mubr.msk.bf16.gmra.mrb[4].mxu0 %vm304_vm2, %v2324_v22  ;;  %v498_v22 = vsel %vm491_vm6, %v495_v15, %v497_v12  ;;  %v1153_v15 = vrot.slane %v1151_v27, 3 }
  0x70   : > { %1900 = vmatprep.mubr.msk.bf16.mxu0 %vm2164_vm1, %v2163_v1 }
  0x73   : > { %1787 = vmatmul.mubr.msk.bf16.gmra.mrb[4].mxu1 %vm304_vm2, %v2318_v20  ;;  %v1148_v20 = vshrl.u32 %v2280_v51, 16 }
  0x74   : > { %1790 = vmatprep.mubr.msk.bf16.mxu1 %vm2164_vm1, %v2163_v1 }
  0x75   : > { %v1150_v30 = vrot.slane %v1148_v20, 2 }
  0x77   : > { %1901 = vmatmul.mubr.msk.bf16.gmra.mrb[8].mxu0 %vm304_vm2, %v2332_v26  ;;  %v499_v26 = vrot.slane %v2276_v46, 1  ;;  %v1154_v51 = vor.u32 %v1153_v15, %v1150_v30  ;;  %v2150_v46 = vld [vmem:[%s2395_s8] sm:$0xff]  }
  0x78   : > { %1904 = vmatprep.mubr.msk.bf16.mxu0 %vm2164_vm1, %v2163_v1 }
  0x79   : > { %v500_v34 = vsel %vm491_vm6, %v497_v12, %v499_v26  ;;  %v1155_v36 = vsel %vm1122_vm5, %v1145_v25, %v1154_v51  ;;  %v502_v37 = vsel %vm491_vm6, %v499_v26, %v501_v21 }
  0x7b   : > { %1791 = vmatmul.mubr.msk.bf16.gmra.mrb[8].mxu1 %vm304_vm2, %v498_v22 }
  0x7c   : > { %1794 = vmatprep.mubr.msk.bf16.mxu1 %vm2164_vm1, %v2163_v1 }
  0x7f   : > { %1905 = vmatmul.mubr.msk.bf16.gmra.mrb[12].mxu0 %vm304_vm2, %v1146_v29 }
  0x80   : > { %1908 = vmatprep.mubr.msk.bf16.mxu0 %vm2164_vm1, %v2163_v1 }
  0x83   : > { %1795 = vmatmul.mubr.msk.bf16.gmra.mrb[12].mxu1 %vm304_vm2, %v500_v34 }
  0x84   : > { %1798 = vmatprep.mubr.msk.bf16.mxu1 %vm2164_vm1, %v2163_v1 }
  0x87   : > { %1909 = vmatmul.mubr.msk.bf16.gmra.mrb[16].mxu0 %vm304_vm2, %v1155_v36 }
  0x88   : > { %1914 = vmatprep.mubr.msk.bf16.mxu0 %vm2164_vm1, %v2163_v1 }
  0x8b   : > { %1799 = vmatmul.mubr.msk.bf16.gmra.mrb[16].mxu1 %vm304_vm2, %v502_v37 }
  0x8c   : > { %1804 = vmatprep.mubr.msk.bf16.mxu1 %vm2164_vm1, %v2163_v1 }
  0x8f   : > { %1915 = vmatmul.mubr.msk.bf16.vlgmr.msra.gmra.mrb[0].mxu0 %vm304_vm2, %v2346_v33  ;;  %v1266_v33 = vsel %vm1259_vm7, %v1263_v43, %v1265_v40 }
  0x90   : > { %1935 = vmatpush3.bf16.msra.mxu0 %v1426_v41  ;;  %1918 = vmatprep.mubr.msk.bf16.mxu0 %vm2164_vm1, %v2163_v1 }
  0x93   : > { %1805 = vmatmul.mubr.msk.bf16.vlgmr.msra.gmra.mrb[0].mxu1 %vm304_vm2, %v2352_v38  ;;  %v2153_v38 = vld [vmem:[%s2395_s8 + $0x18] sm:$0xff]  }
  0x94   : > { %1825 = vmatpush3.bf16.msra.mxu1 %v802_v44  ;;  %1808 = vmatprep.mubr.msk.bf16.mxu1 %vm2164_vm1, %v2163_v1 }
  0x97   : > { %1919 = vmatmul.mubr.msk.bf16.gmra.mrb[4].mxu0 %vm304_vm2, %v1264_v45 }
  0x98   : > { %1922 = vmatprep.mubr.msk.bf16.mxu0 %vm2164_vm1, %v2163_v1 }
  0x9b   : > { %1809 = vmatmul.mubr.msk.bf16.gmra.mrb[4].mxu1 %vm304_vm2, %v2365_v48 }
  0x9c   : > { %1812 = vmatprep.mubr.msk.bf16.mxu1 %vm2164_vm1, %v2163_v1 }
  0x9f   : > { %1923 = vmatmul.mubr.msk.bf16.gmra.mrb[8].mxu0 %vm304_vm2, %v1266_v33 }
  0xa0   : > { %1926 = vmatprep.mubr.msk.bf16.mxu0 %vm2164_vm1, %v2163_v1 }
  0xa3   : > { %1813 = vmatmul.mubr.msk.bf16.gmra.mrb[8].mxu1 %vm304_vm2, %v2368_v49 }
  0xa4   : > { %1816 = vmatprep.mubr.msk.bf16.mxu1 %vm2164_vm1, %v2163_v1 }
  0xa7   : > { %1927 = vmatmul.mubr.msk.bf16.gmra.mrb[12].mxu0 %vm304_vm2, %v1268_v19 }
  0xa8   : > { %1930 = vmatprep.mubr.msk.bf16.mxu0 %vm2164_vm1, %v2163_v1 }
  0xab   : > { %1817 = vmatmul.mubr.msk.bf16.gmra.mrb[12].mxu1 %vm304_vm2, %v2374_v52 }
  0xac   : > { %1820 = vmatprep.mubr.msk.bf16.mxu1 %vm2164_vm1, %v2163_v1 }
  0xaf   : > { %1931 = vmatmul.mubr.msk.bf16.gmra.mrb[16].mxu0 %vm304_vm2, %v2379_v53 }
  0xb0   : > { %1936 = vmatprep.mubr.msk.bf16.mxu0 %vm2164_vm1, %v2163_v1 }
  0xb3   : > { %1821 = vmatmul.mubr.msk.bf16.gmra.mrb[16].mxu1 %vm304_vm2, %v2385_v57 }
  0xb4   : > { %1826 = vmatprep.mubr.msk.bf16.mxu1 %vm2164_vm1, %v2163_v1 }
  0xb7   : > { %1937 = vmatmul.mubr.msk.bf16.vlgmr.msra.gmra.mrb[0].mxu0 %vm1408_vm10, %v2150_v46 }
  0xb8   : > { %1940 = vmatprep.mubr.msk.bf16.mxu0 %vm2164_vm1, %v2163_v1 }
  0xbb   : > { %1827 = vmatmul.mubr.msk.bf16.vlgmr.msra.gmra.mrb[0].mxu1 %vm304_vm2, %v2411_v24 }
  0xbc   : > { %1830 = vmatprep.mubr.msk.bf16.mxu1 %vm2164_vm1, %v2163_v1 }
  0xbf   : > { %1941 = vmatmul.mubr.msk.bf16.gmra.mrb[4].mxu0 %vm1408_vm10, %v2151_v56 }
  0xc0   : > { %1944 = vmatprep.mubr.msk.bf16.mxu0 %vm2164_vm1, %v2163_v1 }
  0xc3   : > { %1831 = vmatmul.mubr.msk.bf16.gmra.mrb[4].mxu1 %vm304_vm2, %v2430_v23 }
  0xc4   : > { %1834 = vmatprep.mubr.msk.bf16.mxu1 %vm2164_vm1, %v2163_v1 }
  0xc7   : > { %1945 = vmatmul.mubr.msk.bf16.gmra.mrb[8].mxu0 %vm1408_vm10, %v2152_v28 }
  0xc8   : > { %1948 = vmatprep.mubr.msk.bf16.mxu0 %vm2164_vm1, %v2163_v1 }
  0xcb   : > { %1835 = vmatmul.mubr.msk.bf16.gmra.mrb[8].mxu1 %vm304_vm2, %v2445_v59 }
  0xcc   : > { %1838 = vmatprep.mubr.msk.bf16.mxu1 %vm2164_vm1, %v2163_v1 }
  0xcf   : > { %1949 = vmatmul.mubr.msk.bf16.gmra.mrb[12].mxu0 %vm1408_vm10, %v2153_v38 }
  0xd0   : > { %1952 = vmatprep.mubr.msk.bf16.mxu0 %vm2164_vm1, %v2163_v1 }
  0xd3   : > { %1839 = vmatmul.mubr.msk.bf16.gmra.mrb[12].mxu1 %vm304_vm2, %v2458_v2 }
  0xd4   : > { %1842 = vmatprep.mubr.msk.bf16.mxu1 %vm2164_vm1, %v2163_v1 }
  0xd7   : > { %1953 = vmatmul.mubr.msk.bf16.gmra.mrb[16].mxu0 %vm1408_vm10, %v2154_v42 }
  0xdb   : > { %1843 = vmatmul.mubr.msk.bf16.gmra.mrb[16].mxu1 %vm304_vm2, %v2473_v16 }
 0x18a   : > { %v1462_v48 = vpop.f32.mrb[0].mxu0 }
 0x18b   : > { %v1938_v49 = vpop.f32.mrb[1].mxu0 }
 0x18c   : > { %v1465_v52 = vpop.f32.mrb[2].mxu0 }
 0x18d   : > { %v1939_v53 = vpop.f32.mrb[3].mxu0 }
 0x18e   : > { %v838_v57 = vpop.f32.mrb[0].mxu1 }
 0x18f   : > { %v1956_v1 = vadd.f32 %v1462_v48, %v838_v57  ;;  %v1828_v24 = vpop.f32.mrb[1].mxu1 }
 0x190   : > { %v841_v23 = vpop.f32.mrb[2].mxu1 }
 0x191   : > { %1511 = vst.msk [vmem:[%s2640_s25] sm:$0xff] %vm304_vm2, %v1956_v1  ;;  %v1957_v47 = vadd.f32 %v1465_v52, %v841_v23  ;;  %v1829_v50 = vpop.f32.mrb[3].mxu1 }
 0x192   : > { %v1470_v54 = vpop.f32.mrb[4].mxu0 }
 0x193   : > { %1512 = vst.msk [vmem:[%s2640_s25 + $0x8] sm:$0xff] %vm304_vm2, %v1957_v47  ;;  %v1942_v14 = vpop.f32.mrb[5].mxu0 }
 0x194   : > { %v1473_v58 = vpop.f32.mrb[6].mxu0 }
 0x195   : > { %v1943_v59 = vpop.f32.mrb[7].mxu0 }
 0x196   : > { %v846_v35 = vpop.f32.mrb[4].mxu1 }
 0x197   : > { %v1958_v60 = vadd.f32 %v1470_v54, %v846_v35  ;;  %v1832_v62 = vpop.f32.mrb[5].mxu1 }
 0x198   : > { %v849_v63 = vpop.f32.mrb[6].mxu1 }
 0x199   : > { %1513 = vst.msk [vmem:[%s2640_s25 + $0x10] sm:$0xff] %vm304_vm2, %v1958_v60  ;;  %v1959_v0 = vadd.f32 %v1473_v58, %v849_v63  ;;  %v1833_v3 = vpop.f32.mrb[7].mxu1 }
 0x19a   : > { %v1478_v2 = vpop.f32.mrb[8].mxu0 }
 0x19b   : > { %1514 = vst.msk [vmem:[%s2640_s25 + $0x18] sm:$0xff] %vm304_vm2, %v1959_v0  ;;  %v1946_v9 = vpop.f32.mrb[9].mxu0 }
 0x19c   : > { %v1481_v55 = vpop.f32.mrb[10].mxu0 }
 0x19d   : > { %v1947_v4 = vpop.f32.mrb[11].mxu0 }
 0x19e   : > { %v854_v5 = vpop.f32.mrb[8].mxu1 }
 0x19f   : > { %v1960_v6 = vadd.f32 %v1478_v2, %v854_v5  ;;  %v1836_v11 = vpop.f32.mrb[9].mxu1 }
 0x1a0   : > { %v857_v16 = vpop.f32.mrb[10].mxu1 }
 0x1a1   : > { %1515 = vst.msk [vmem:[%s2640_s25 + $0x20] sm:$0xff] %vm304_vm2, %v1960_v6  ;;  %v1961_v61 = vadd.f32 %v1481_v55, %v857_v16  ;;  %v1837_v31 = vpop.f32.mrb[11].mxu1 }
 0x1a2   : > { %v1486_v17 = vpop.f32.mrb[12].mxu0 }
 0x1a3   : > { %1516 = vst.msk [vmem:[%s2640_s25 + $0x28] sm:$0xff] %vm304_vm2, %v1961_v61  ;;  %v1950_v7 = vpop.f32.mrb[13].mxu0 }
 0x1a4   : > { %v1489_v8 = vpop.f32.mrb[14].mxu0 }
 0x1a5   : > { %v1951_v10 = vpop.f32.mrb[15].mxu0 }
 0x1a6   : > { %v862_v12 = vpop.f32.mrb[12].mxu1 }
 0x1a7   : > { %v1962_v18 = vadd.f32 %v1486_v17, %v862_v12  ;;  %v1840_v13 = vpop.f32.mrb[13].mxu1 }
 0x1a8   : > { %v865_v22 = vpop.f32.mrb[14].mxu1 }
 0x1a9   : > { %1517 = vst.msk [vmem:[%s2640_s25 + $0x30] sm:$0xff] %vm304_vm2, %v1962_v18  ;;  %v1963_v25 = vadd.f32 %v1489_v8, %v865_v22  ;;  %v1841_v20 = vpop.f32.mrb[15].mxu1 }
 0x1aa   : > { %v1494_v27 = vpop.f32.mrb[16].mxu0 }
 0x1ab   : > { %1518 = vst.msk [vmem:[%s2640_s25 + $0x38] sm:$0xff] %vm304_vm2, %v1963_v25  ;;  %v1954_v29 = vpop.f32.mrb[17].mxu0 }
 0x1ac   : > { %v1497_v26 = vpop.f32.mrb[18].mxu0 }
 0x1ad   : > { %v1955_v30 = vpop.f32.mrb[19].mxu0 }
 0x1ae   : > { %v870_v15 = vpop.f32.mrb[16].mxu1 }
 0x1af   : > { %v1964_v34 = vadd.f32 %v1494_v27, %v870_v15  ;;  %v1844_v51 = vpop.f32.mrb[17].mxu1 }
 0x1b0   : > { %v873_v36 = vpop.f32.mrb[18].mxu1 }
 0x1b1   : > { %1519 = vst.msk [vmem:[%s2640_s25 + $0x40] sm:$0xff] %vm304_vm2, %v1964_v34  ;;  %v1965_v21 = vadd.f32 %v1497_v26, %v873_v36  ;;  %v1845_v37 = vpop.f32.mrb[19].mxu1 }
 0x1b3   : > { %1520 = vst.msk [vmem:[%s2640_s25 + $0x48] sm:$0xff] %vm304_vm2, %v1965_v21 }
 0x1b4 PF: > { %s14_s15 = sadd.s32 1, %s2161_s15  }
 0x1b5   : > { %p11_p5 = scmp.ge.s32.totalorder %s14_s15, 4  }
 0x1b7   :  { %13 = sbr.rel (!%p11_p5) target bundleno = 1 (0x1), region = 77 }

// kernel: basic_block_forward.2
= control target key start
LH: loop header
LB: loop body
LE: loop exit
PB: predicated region body
PF: predicated region fallthrough
CT: control target
= control target key end

     0   :  { %s4620_s15 = smov 0   ;;  %s5752_s0 = inlined_call_operand.vmem [shape: bf16[656,4], index: 0, kind: input, shape index: {}]   ;;  %s5753_s1 = inlined_call_operand.vmem [shape: bf16[9,4,8], index: 1, kind: input, shape index: {}]   ;;  %s5754_s2 = inlined_call_operand.vmem [shape: f32[1,8], index: 2, kind: input, shape index: {}]   ;;  %s5755_s3 = inlined_call_operand.vmem [shape: f32[1,8], index: 3, kind: input, shape index: {}]   ;;  %s5756_s4 = inlined_call_operand.vmem [shape: bf16[576,8], index: 4, kind: output, shape index: {}]  }
   0x1 LB: > { %s3467_s16 = sadd.s32 4294967295, %s4593_s15   ;;  %p3471_p0 = scmp.ge.s32.totalorder %s4593_s15, 1  ;;  %s4593_s15 = sphi %s4620_s15, %s14_s15  }
   0x2   : > { %p163_p1 = scmp.lt.s32.totalorder %s4593_s15, 3 }
   0x4   : > { %p164_p2 = pnand %p3471_p0, %p163_p1 }
   0x6   : > { %167 = sbr.rel (%p164_p2) target bundleno = 579 (0x243), region = 36 }
   0xd   : > { %vm510_vm0 = vcmask 1041408   ;;  %v4631_v0 = vld [vmem:[%s5753_s1 + $0x8] sm:$0x3]  ;;  %v3493_v1 = vld [vmem:[%s5753_s1 + $0x2] sm:$0x3]  ;;  %s189_s21 = smul.u32 41, %s3467_s16 }
   0xe   : > { %4550 = vmatprep.subr.msk.bf16.mxu0 %vm510_vm0, %v4631_v0  ;;  %4546 = vmatprep.subr.msk.bf16.mxu1 %vm510_vm0, %v3493_v1  ;;  %v4643_v2 = vsel %vm510_vm0, %v4631_v0, 0  ;;  %v512_v3 = vsel %vm510_vm0, %v3493_v1, 0  ;;  %v3589_v4 = vld [vmem:[%s5753_s1 + $0xa] sm:$0x3]  ;;  %v302_v5 = vld [vmem:[%s5753_s1] sm:$0x3] }
   0xf   : > { %5788 = vst [vmem:[#allocation2_spill] sm:$0xff] %v4643_v2  ;;  %4067 = vmatpush3.bf16.msra.mxu0 %v4643_v2  ;;  %3915 = vmatpush3.bf16.msra.mxu1 %v512_v3  ;;  %p190_p3 = scmp.lt.s32.totalorder %s189_s21, 81  ;;  %vm306_vm1 = vsmask.f32 7424  ;;  %vm1470_vm2 = vsmask.f32 6400 }
  0x10   : > { %4552 = vmatprep.subr.msk.bf16.mxu0 %vm510_vm0, %v3589_v4  ;;  %4547 = vmatprep.subr.msk.bf16.mxu1 %vm510_vm0, %v302_v5  ;;  %vm455_vm3 = vcmask 31744   ;;  %v1921_v8 = vsel %vm510_vm0, %v3589_v4, 0  ;;  %v728_v10 = vsel %vm510_vm0, %v302_v5, 0  ;;  %v4705_v36 = vld [vmem:[%s5753_s1 + $0x4] sm:$0x3]  ;;  %vm1828_vm4 = vcmask 1045504  }
  0x11   : > { %s5825_s21 = smov (!%p190_p3, %s189_s21), 81  ;;  %v4736_v51 = vld [vmem:[%s5753_s1 + $0xc] sm:$0x3]  ;;  %vm2370_vm5 = vsmask.f32 5376  ;;  %vm928_vm6 = vcmask 1046528  }
  0x12   : > { %s3472_s26 = sshll.u32 %s5825_s21, 2  ;;  %vm2728_vm7 = vcmask 1044480   ;;  %s195_s14 = smul.u32 36, %s3467_s16  ;;  %vm3374_vm9 = vcmask 60416  }
  0x13   : > { %s4658_s29 = scalar_lea.vmem %s5752_s0, %s3472_s26 }
  0x14   : > { %v4661_v6 = vld [vmem:[%s4658_s29] sm:$0xff]   ;;  %v4664_v7 = vld [vmem:[%s4658_s29 + $0x8] sm:$0xff]   ;;  %v4668_v9 = vld [vmem:[%s4658_s29 + $0x10] sm:$0xff]   ;;  %p196_p4 = scmp.lt.s32.totalorder %s195_s14, 71 }
  0x15   : > { %v308_v11 = vshrl.u32 %v4661_v6, 16  ;;  %v310_v12 = vshll.u32 %v4661_v6, 16  ;;  %v315_v13 = vshll.u32 %v4664_v7, 16  ;;  %v319_v14 = vshrl.u32 %v4664_v7, 16  ;;  %v4682_v17 = vld [vmem:[%s4658_s29 + $0x18] sm:$0xff]   ;;  %v4685_v18 = vld [vmem:[%s4658_s29 + $0x20] sm:$0xff]  }
  0x16   : > { %v4676_v15 = vshll.u32 %v4668_v9, 16  ;;  %v4679_v16 = vshrl.u32 %v4668_v9, 16  ;;  %v4691_v26 = vshll.u32 %v4682_v17, 16  ;;  %v4694_v30 = vshrl.u32 %v4682_v17, 16  ;;  %v4697_v31 = vld [vmem:[%s4658_s29 + $0x28] sm:$0xff]   ;;  %v4714_v41 = vld [vmem:[%s4658_s29 + $0x30] sm:$0xff]  }
  0x17   : > { %v312_v19 = vrot.slane %v310_v12, 1  ;;  %v317_v20 = vrot.slane %v315_v13, 1  ;;  %v1471_v21 = vrot.slane %v319_v14, 1  ;;  %v1472_v22 = vrot.slane %v315_v13, 2  ;;  %v4731_v50 = vld [vmem:[%s4658_s29 + $0x38] sm:$0xff]   ;;  %v4759_v63 = vld [vmem:[%s4658_s29 + $0x40] sm:$0xff]  }
  0x18   : > { %v1474_v23 = vrot.slane %v4679_v16, 1  ;;  %v1475_v24 = vrot.slane %v4676_v15, 2  ;;  %v325_v25 = vrot.slane %v4676_v15, 1  ;;  %v1479_v33 = vrot.slane %v4691_v26, 2  ;;  %s5827_s14 = smov (!%p196_p4, %s195_s14), 71 }
  0x19   : > { %v313_v27 = vor.u32 %v312_v19, %v308_v11  ;;  %v321_v28 = vor.u32 %v319_v14, %v317_v20  ;;  %v1473_v29 = vor.u32 %v1472_v22, %v1471_v21  ;;  %v333_v35 = vrot.slane %v4691_v26, 1  ;;  %s3473_s16 = sshll.u32 %s5827_s14, 2 }
  0x1a   : > { %v1476_v32 = vor.u32 %v1475_v24, %v1474_v23  ;;  %v329_v34 = vor.u32 %v4679_v16, %v325_v25  ;;  %v1478_v39 = vrot.slane %v4694_v30, 1  ;;  %v4711_v40 = vshll.u32 %v4685_v18, 16  ;;  %v4786_v23 = vld [vmem:[%s4658_s29 + $0x48] sm:$0xff]   ;;  %s5581_s23 = scalar_lea.vmem %s5756_s4, %s3473_s16 }
  0x1b   : > { %v318_v37 = vsel %vm306_vm1, %v313_v27, %v317_v20  ;;  %v326_v38 = vsel %vm306_vm1, %v321_v28, %v325_v25  ;;  %v4720_v44 = vshrl.u32 %v4685_v18, 16  ;;  %v337_v45 = vor.u32 %v4694_v30, %v333_v35  ;;  %v4793_v28 = vld [vmem:[%s4658_s29 + $0x50] sm:$0xff]  }
  0x1c   : > { %3916 = vmatprep.mubr.msk.bf16.mxu1 %vm455_vm3, %v318_v37  ;;  %v1477_v42 = vsel %vm1470_vm2, %v1473_v29, %v1476_v32  ;;  %v334_v43 = vsel %vm306_vm1, %v329_v34, %v333_v35  ;;  %v1480_v46 = vor.u32 %v1479_v33, %v1478_v39  ;;  %v1483_v47 = vrot.slane %v4711_v40, 2 }
  0x1d   : > { %4068 = vmatprep.mubr.msk.bf16.mxu0 %vm455_vm3, %v1477_v42  ;;  %3917 = vmatmul.mubr.msk.bf16.vlgmr.msra.gmra.mrb[0].mxu1 %vm455_vm3, %v326_v38  ;;  %v341_v48 = vrot.slane %v4711_v40, 1  ;;  %v4728_v49 = vshll.u32 %v4697_v31, 16  ;;  %v1482_v52 = vrot.slane %v4720_v44, 1  ;;  %v4741_v53 = vshrl.u32 %v4697_v31, 16 }
  0x1e   : > { %3920 = vmatprep.mubr.msk.bf16.mxu1 %vm455_vm3, %v334_v43  ;;  %3953 = vmatpush3.bf16.msra.mxu1 %v728_v10  ;;  %v4744_v54 = vshll.u32 %v4714_v41, 16  ;;  %v4747_v55 = vshrl.u32 %v4714_v41, 16  ;;  %v1481_v56 = vsel %vm1470_vm2, %v1476_v32, %v1480_v46  ;;  %v4763_v3 = vshll.u32 %v4731_v50, 16 }
  0x1f   : > { %v1487_v57 = vrot.slane %v4728_v49, 2  ;;  %v345_v58 = vor.u32 %v4720_v44, %v341_v48  ;;  %4548 = vmatprep.subr.msk.bf16.mxu1 %vm510_vm0, %v4705_v36  ;;  %4069 = vmatmul.mubr.msk.bf16.vlgmr.msra.gmra.mrb[0].mxu0 %vm455_vm3, %v1481_v56  ;;  %v1484_v59 = vor.u32 %v1483_v47, %v1482_v52  ;;  %v1486_v60 = vrot.slane %v4741_v53, 1  ;;  %v4820_v56 = vld [vmem:[%s4658_s29 + $0x58] sm:$0xff]  }
  0x20   : > { %v349_v61 = vrot.slane %v4728_v49, 1  ;;  %v1490_v62 = vrot.slane %v4747_v55, 1  ;;  %4105 = vmatpush3.bf16.msra.mxu0 %v1921_v8  ;;  %v1491_v1 = vrot.slane %v4744_v54, 2  ;;  %v4766_v4 = vshrl.u32 %v4731_v50, 16 }
  0x21   : > { %v1485_v5 = vsel %vm1470_vm2, %v1480_v46, %v1484_v59  ;;  %v342_v10 = vsel %vm306_vm1, %v337_v45, %v341_v48  ;;  %v1488_v11 = vor.u32 %v1487_v57, %v1486_v60  ;;  %4553 = vmatprep.subr.msk.bf16.mxu0 %vm510_vm0, %v4736_v51  ;;  %v357_v13 = vrot.slane %v4744_v54, 1 }
  0x22   : > { %4072 = vmatprep.mubr.msk.bf16.mxu0 %vm455_vm3, %v1485_v5  ;;  %v350_v8 = vsel %vm306_vm1, %v345_v58, %v349_v61  ;;  %v1492_v12 = vor.u32 %v1491_v1, %v1490_v62  ;;  %v4776_v14 = vshll.u32 %v4759_v63, 16  ;;  %v1494_v20 = vrot.slane %v4766_v4, 1 }
  0x23   : > { %v1489_v19 = vsel %vm1470_vm2, %v1484_v59, %v1488_v11  ;;  %v1495_v21 = vrot.slane %v4763_v3, 2  ;;  %v4783_v22 = vshrl.u32 %v4759_v63, 16  ;;  %v353_v25 = vor.u32 %v4741_v53, %v349_v61 }
  0x24   : > { %v1493_v24 = vsel %vm1470_vm2, %v1488_v11, %v1492_v12  ;;  %v1499_v27 = vrot.slane %v4776_v14, 2  ;;  %v361_v29 = vor.u32 %v4747_v55, %v357_v13  ;;  %v365_v32 = vrot.slane %v4763_v3, 1 }
  0x25   : > { %3921 = vmatmul.mubr.msk.bf16.gmra.mrb[4].mxu1 %vm455_vm3, %v342_v10  ;;  %v1498_v33 = vrot.slane %v4783_v22, 1  ;;  %v1496_v34 = vor.u32 %v1495_v21, %v1494_v20  ;;  %v4801_v35 = vshll.u32 %v4786_v23, 16  ;;  %v4804_v37 = vshrl.u32 %v4786_v23, 16 }
  0x26   : > { %3924 = vmatprep.mubr.msk.bf16.mxu1 %vm455_vm3, %v350_v8  ;;  %v358_v38 = vsel %vm306_vm1, %v353_v25, %v357_v13  ;;  %v4808_v42 = vshll.u32 %v4793_v28, 16  ;;  %v4811_v43 = vshrl.u32 %v4793_v28, 16  ;;  %v366_v45 = vsel %vm306_vm1, %v361_v29, %v365_v32  ;;  %v4840_v13 = vld [vmem:[%s4658_s29 + $0x88] sm:$0xff]   ;;  %v4848_v25 = vld [vmem:[%s4658_s29 + $0x60] sm:$0xff]  }
  0x27   : > { %4073 = vmatmul.mubr.msk.bf16.gmra.mrb[4].mxu0 %vm455_vm3, %v1489_v19  ;;  %v1500_v39 = vor.u32 %v1499_v27, %v1498_v33  ;;  %v1497_v46 = vsel %vm1470_vm2, %v1492_v12, %v1496_v34  ;;  %v373_v47 = vrot.slane %v4776_v14, 1  ;;  %v1502_v48 = vrot.slane %v4804_v37, 1  ;;  %v238_v27 = vld [vmem:[%s4658_s29 + $0x90] sm:$0xf] }
  0x28   : > { %4076 = vmatprep.mubr.msk.bf16.mxu0 %vm455_vm3, %v1493_v24  ;;  %v1503_v52 = vrot.slane %v4801_v35, 2  ;;  %v369_v58 = vor.u32 %v4766_v4, %v365_v32  ;;  %v1506_v59 = vrot.slane %v4811_v43, 1  ;;  %v1507_v60 = vrot.slane %v4808_v42, 2 }
  0x29   : > { %v1501_v57 = vsel %vm1470_vm2, %v1496_v34, %v1500_v39  ;;  %v377_v61 = vor.u32 %v4783_v22, %v373_v47  ;;  %v381_v62 = vrot.slane %v4801_v35, 1  ;;  %v4832_v5 = vshll.u32 %v4820_v56, 16 }
  0x2a   : > { %v1504_v1 = vor.u32 %v1503_v52, %v1502_v48  ;;  %v4835_v10 = vshrl.u32 %v4820_v56, 16  ;;  %v374_v11 = vsel %vm306_vm1, %v369_v58, %v373_v47  ;;  %v1508_v8 = vor.u32 %v1507_v60, %v1506_v59 }
  0x2b   : > { %5789 = vst [vmem:[#allocation3_spill] sm:$0xff] %v4832_v5  ;;  %v382_v12 = vsel %vm306_vm1, %v377_v61, %v381_v62  ;;  %v389_v20 = vrot.slane %v4808_v42, 1  ;;  %v1511_v24 = vrot.slane %v4832_v5, 2  ;;  %v385_v32 = vor.u32 %v4804_v37, %v381_v62 }
  0x2c   : > { %5790 = vst [vmem:[#allocation4_spill] sm:$0xff] %v4835_v10  ;;  %v1505_v19 = vsel %vm1470_vm2, %v1500_v39, %v1504_v1  ;;  %v1510_v21 = vrot.slane %v4835_v10, 1  ;;  %v1509_v29 = vsel %vm1470_vm2, %v1504_v1, %v1508_v8  ;;  %v397_v34 = vrot.slane %v4832_v5, 1 }
  0x2d   : > { %3925 = vmatmul.mubr.msk.bf16.gmra.mrb[8].mxu1 %vm455_vm3, %v358_v38  ;;  %v393_v33 = vor.u32 %v4811_v43, %v389_v20  ;;  %v4857_v38 = vld [vmem:[%s4658_s29 + $0x68] sm:$0xff]   ;;  %v4860_v39 = vshll.u32 %v4840_v13, 16  ;;  %v4872_v48 = vshll.u32 %v4848_v25, 16  ;;  %v1829_v58 = vrot.slane %v4664_v7, 2 }
  0x2e   : > { %3928 = vmatprep.mubr.msk.bf16.mxu1 %vm455_vm3, %v366_v45  ;;  %v4863_v45 = vcombine.low %v238_v27, %v238_v27  ;;  %v4869_v47 = vor.u32 %v1511_v24, %v1510_v21  ;;  %v1830_v59 = vrot.slane %v4668_v9, 2  ;;  %v4881_v62 = vshrl.u32 %v4848_v25, 16  ;;  %v4894_v21 = vld [vmem:[%s4658_s29 + $0x70] sm:$0xff]  }
  0x2f   : > { %4077 = vmatmul.mubr.msk.bf16.gmra.mrb[8].mxu0 %vm455_vm3, %v1497_v46  ;;  %v4866_v46 = vshrl.u32 %v4840_v13, 16  ;;  %5794 = vst [vmem:[#allocation8_spill] sm:$0xff] %v4872_v48  ;;  %v5757_v52 = vrot.slane %v4860_v39, 1  ;;  %v398_v61 = vsel %vm306_vm1, %v393_v33, %v397_v34  ;;  %v4884_v1 = vshll.u32 %v4857_v38, 16 }
  0x30   : > { %4080 = vmatprep.mubr.msk.bf16.mxu0 %vm455_vm3, %v1501_v57  ;;  %5791 = vst [vmem:[#allocation5_spill] sm:$0xff] %v4863_v45  ;;  %5793 = vst [vmem:[#allocation7_spill] sm:$0xff] %v4869_v47  ;;  %v390_v57 = vsel %vm306_vm1, %v385_v32, %v389_v20  ;;  %v451_v60 = vshll.u32 %v4863_v45, 16  ;;  %v405_v20 = vrot.slane %v4872_v48, 1  ;;  %v1831_v24 = vsel %vm1828_vm4, %v1829_v58, %v1830_v59 }
  0x31   : > { %5792 = vst [vmem:[#allocation6_spill] sm:$0xff] %v4866_v46  ;;  %5795 = vst [vmem:[#allocation9_spill] sm:$0xff] %v4881_v62  ;;  %v4911_v58 = vshll.u32 %v4894_v21, 16  ;;  %v5805_v5 = vrot.slane %v4860_v39, 1  ;;  %v2379_v45 = vrot.slane %v4711_v40, 3  ;;  %v1844_v40 = vrot.slane %v4786_v23, 2 }
  0x32   : > { %5796 = vst [vmem:[#allocation10_spill] sm:$0xff] %v4884_v1  ;;  %v409_v33 = vor.u32 %v4881_v62, %v405_v20 }
  0x33   : > { %5797 = vst [vmem:[#allocation11_spill] sm:$0xff] %v4911_v58 }
  0x35   : > { %3929 = vmatmul.mubr.msk.bf16.gmra.mrb[12].mxu1 %vm455_vm3, %v374_v11  ;;  %v449_v11 = vor.u32 %v4866_v46, %v5757_v52  ;;  %v4920_v52 = vshrl.u32 %v4894_v21, 16 }
  0x36   : > { %3932 = vmatprep.mubr.msk.bf16.mxu1 %vm455_vm3, %v382_v12  ;;  %v453_v12 = vrot.slane %v451_v60, 1  ;;  %v1832_v60 = vrot.slane %v4682_v17, 2 }
  0x37   : > { %4081 = vmatmul.mubr.msk.bf16.gmra.mrb[12].mxu0 %vm455_vm3, %v1505_v19  ;;  %v1513_v19 = vsel %vm1470_vm2, %v1508_v8, %v4869_v47  ;;  %v4905_v8 = vld [vmem:[%s4658_s29 + $0x78] sm:$0xff]   ;;  %5799 = vst [vmem:[#allocation13_spill] sm:$0xff] %v4920_v52  ;;  %v4932_v47 = vld [vmem:[%s4658_s29 + $0x80] sm:$0xff]  }
  0x38   : > { %4084 = vmatprep.mubr.msk.bf16.mxu0 %vm455_vm3, %v1509_v29  ;;  %v401_v29 = vor.u32 %v4835_v10, %v397_v34  ;;  %v4900_v32 = vsel %vm306_vm1, %v449_v11, %v453_v12  ;;  %v4916_v11 = vshrl.u32 %v4857_v38, 16  ;;  %v2378_v10 = vrot.slane %v4720_v44, 2 }
  0x39   : > { %v2382_v44 = vrot.slane %v4741_v53, 2 }
  0x3a   : > { %v406_v34 = vsel %vm306_vm1, %v401_v29, %v405_v20  ;;  %5798 = vst [vmem:[#allocation12_spill] sm:$0xff] %v4916_v11  ;;  %v4928_v20 = vsel %vm1828_vm4, %v1830_v59, %v1832_v60  ;;  %v421_v29 = vrot.slane %v4911_v58, 1  ;;  %v4948_v58 = vld [vmem:[%s5753_s1 + $0xe] sm:$0x3] }
  0x3d   : > { %3933 = vmatmul.mubr.msk.bf16.gmra.mrb[16].mxu1 %vm455_vm3, %v390_v57  ;;  %v413_v57 = vrot.slane %v4884_v1, 1  ;;  %v425_v1 = vor.u32 %v4920_v52, %v421_v29  ;;  %v4968_v52 = vshrl.u32 %v4905_v8, 16 }
  0x3e   : > { %3936 = vmatprep.mubr.msk.bf16.mxu1 %vm455_vm3, %v398_v61  ;;  %v1834_v61 = vrot.slane %v4685_v18, 2 }
  0x3f   : > { %4085 = vmatmul.mubr.msk.bf16.gmra.mrb[16].mxu0 %vm455_vm3, %v1513_v19  ;;  %v414_v12 = vsel %vm306_vm1, %v409_v33, %v413_v57  ;;  %v4923_v19 = vshll.u32 %v4905_v8, 16  ;;  %v2153_v33 = vsel %vm510_vm0, %v4736_v51, 0  ;;  %v417_v2 = vor.u32 %v4916_v11, %v413_v57  ;;  %v4953_v51 = vld [vmem:[%s4658_s29 + $0x98] sm:$0xf]  ;;  %5803 = vst [vmem:[#allocation17_spill] sm:$0xff] %v4968_v52 }
  0x40   : > { %4106 = vmatprep.mubr.msk.bf16.mxu0 %vm455_vm3, %v1831_v24  ;;  %v239_v24 = vld [vmem:[%s4658_s29 + $0x94] sm:$0xf]  ;;  %v4938_v46 = vsel %vm1828_vm4, %v1832_v60, %v1834_v61  ;;  %v241_v60 = vld [vmem:[%s4658_s29 + $0x9c] sm:$0xf]  ;;  %v1836_v57 = vrot.slane %v4697_v31, 2  ;;  %v4974_v11 = vshrl.u32 %v4932_v47, 16 }
  0x41   : > { %5800 = vst [vmem:[#allocation14_spill] sm:$0xff] %v4923_v19  ;;  %v4943_v59 = vcombine.low %v238_v27, %v239_v24  ;;  %v4960_v27 = vshll.u32 %v4932_v47, 16  ;;  %v422_v24 = vsel %vm306_vm1, %v417_v2, %v421_v29 }
  0x42   : > { %5804 = vst [vmem:[#allocation18_spill] sm:$0xff] %v4974_v11  ;;  %v4982_v2 = vsel %vm1828_vm4, %v1834_v61, %v1836_v57  ;;  %v2371_v61 = vrot.slane %v4679_v16, 2 }
  0x43   : > { %5801 = vst [vmem:[#allocation15_spill] sm:$0xff] %v4943_v59  ;;  %5802 = vst [vmem:[#allocation16_spill] sm:$0xff] %v4960_v27  ;;  %v4977_v48 = vrot.slane %v4943_v59, 2  ;;  %v437_v29 = vrot.slane %v4960_v27, 1  ;;  %v2372_v27 = vrot.slane %v4676_v15, 3 }
  0x45   : > { %3937 = vmatmul.mubr.msk.bf16.gmra.mrb[20].mxu1 %vm455_vm3, %v406_v34  ;;  %v429_v34 = vrot.slane %v4923_v19, 1  ;;  %v1838_v19 = vrot.slane %v4714_v41, 2 }
  0x46   : > { %3940 = vmatprep.mubr.msk.bf16.mxu1 %vm455_vm3, %v414_v12  ;;  %v4963_v12 = vcombine.low %v4953_v51, %v241_v60 }
  0x47   : > { %4107 = vmatmul.mubr.msk.bf16.vlgmr.msra.gmra.mrb[0].mxu0 %vm455_vm3, %v4928_v20  ;;  %v4993_v59 = vsel %vm1828_vm4, %v1836_v57, %v1838_v19  ;;  %v433_v62 = vor.u32 %v4968_v52, %v429_v34  ;;  %v2375_v57 = vrot.slane %v4691_v26, 3  ;;  %v2373_v52 = vor.u32 %v2372_v27, %v2371_v61 }
  0x48   : > { %4143 = vmatpush3.bf16.msra.mxu0 %v2153_v33  ;;  %4110 = vmatprep.mubr.msk.bf16.mxu0 %vm455_vm3, %v4938_v46  ;;  %v430_v33 = vsel %vm306_vm1, %v425_v1, %v429_v34  ;;  %v5780_v60 = vrot.slane %v4963_v12, 2  ;;  %v1850_v61 = vrot.slane %v4848_v25, 2 }
  0x49   : > { %4554 = vmatprep.subr.msk.bf16.mxu0 %vm510_vm0, %v4948_v58  ;;  %v438_v34 = vsel %vm306_vm1, %v433_v62, %v437_v29  ;;  %v2380_v62 = vor.u32 %v2379_v45, %v2378_v10  ;;  %v2383_v10 = vrot.slane %v4728_v49, 3  ;;  %v1846_v45 = vrot.slane %v4793_v28, 2 }
  0x4a   : > { %v4989_v1 = vsel %vm1828_vm4, %v4977_v48, %v5780_v60  ;;  %v1840_v60 = vrot.slane %v4731_v50, 2 }
  0x4b   : > { %v5048_v49 = vsel %vm1828_vm4, %v1844_v40, %v1846_v45 }
  0x4d   : > { %3941 = vmatmul.mubr.msk.bf16.gmra.mrb[24].mxu1 %vm455_vm3, %v422_v24  ;;  %v441_v24 = vor.u32 %v4974_v11, %v437_v29  ;;  %v1842_v11 = vrot.slane %v4759_v63, 2 }
  0x4e   : > { %3944 = vmatprep.mubr.msk.bf16.mxu1 %vm455_vm3, %v430_v33  ;;  %v2374_v33 = vrot.slane %v4694_v30, 2  ;;  %v5015_v30 = vsel %vm1828_vm4, %v1838_v19, %v1840_v60  ;;  %v2386_v19 = vrot.slane %v4747_v55, 2  ;;  %v2390_v55 = vrot.slane %v4766_v4, 2  ;;  %v5068_v4 = vld [vmem:[%s5753_s1 + $0x6] sm:$0x3] }
  0x4f   : > { %4111 = vmatmul.mubr.msk.bf16.gmra.mrb[4].mxu0 %vm455_vm3, %v4982_v2  ;;  %v446_v16 = vsel %vm306_vm1, %v441_v24, %v5805_v5  ;;  %v5022_v27 = vsel %vm1828_vm4, %v1840_v60, %v1842_v11  ;;  %v2387_v60 = vrot.slane %v4744_v54, 3  ;;  %v5040_v29 = vsel %vm1828_vm4, %v1842_v11, %v1844_v40 }
  0x50   : > { %4114 = vmatprep.mubr.msk.bf16.mxu0 %vm455_vm3, %v4993_v59  ;;  %v2376_v15 = vor.u32 %v2375_v57, %v2374_v33  ;;  %v1848_v11 = vrot.slane %v4820_v56, 2  ;;  %v1021_v57 = vsel %vm510_vm0, %v4705_v36, 0  ;;  %v2399_v40 = vrot.slane %v4801_v35, 3 }
  0x51   : > { %v2388_v53 = vor.u32 %v2387_v60, %v2386_v19  ;;  %v2403_v19 = vrot.slane %v4808_v42, 3 }
  0x52   : > { %v5018_v26 = vsel %vm2370_vm5, %v2373_v52, %v2376_v15  ;;  %v5025_v5 = vsel %vm2370_vm5, %v2376_v15, %v2380_v62  ;;  %v2384_v52 = vor.u32 %v2383_v10, %v2382_v44  ;;  %v5076_v15 = vsel %vm1828_vm4, %v1846_v45, %v1848_v11 }
  0x53   : > { %v5081_v36 = vsel %vm1828_vm4, %v1848_v11, %v1850_v61  ;;  %v1852_v44 = vrot.slane %v4857_v38, 2  ;;  %v1854_v10 = vrot.slane %v4894_v21, 2 }
  0x54   : > { %v5043_v24 = vsel %vm2370_vm5, %v2380_v62, %v2384_v52  ;;  %v5053_v54 = vsel %vm2370_vm5, %v2384_v52, %v2388_v53  ;;  %v2402_v52 = vrot.slane %v4811_v43, 2  ;;  %v1856_v43 = vrot.slane %v4905_v8, 2 }
  0x55   : > { %3945 = vmatmul.mubr.msk.bf16.gmra.mrb[28].mxu1 %vm455_vm3, %v438_v34  ;;  %v2394_v34 = vrot.slane %v4783_v22, 2  ;;  %v2398_v22 = vrot.slane %v4804_v37, 2  ;;  %v5104_v35 = vsel %vm1828_vm4, %v1850_v61, %v1852_v44  ;;  %v1860_v61 = vrot.slane %v4840_v13, 2 }
  0x56   : > { %3948 = vmatprep.mubr.msk.bf16.mxu1 %vm455_vm3, %v446_v16  ;;  %v2395_v16 = vrot.slane %v4776_v14, 3  ;;  %v5106_v37 = vor.u32 %v2403_v19, %v2402_v52  ;;  %v5273_v52 = vld [vmem:[%s4658_s29 + $0xa0] ss:$0 sps:$4 sm:$0xff]   ;;  %v948_v19 = vrot.slane %v4793_v28, 1 }
  0x57   : > { %4115 = vmatmul.mubr.msk.bf16.gmra.mrb[8].mxu0 %vm455_vm3, %v5015_v30  ;;  %v2400_v45 = vor.u32 %v2399_v40, %v2398_v22  ;;  %v944_v40 = vrot.slane %v4759_v63, 1 }
  0x58   : > { %4118 = vmatprep.mubr.msk.bf16.mxu0 %vm455_vm3, %v5022_v27  ;;  %v2396_v62 = vor.u32 %v2395_v16, %v2394_v34  ;;  %v5151_v34 = vsel %vm1828_vm4, %v1860_v61, %v4977_v48 }
  0x59   : > { %v5115_v42 = vsel %vm2370_vm5, %v2400_v45, %v5106_v37 }
  0x5a   : > { %v5099_v60 = vsel %vm2370_vm5, %v2396_v62, %v2400_v45 }
  0x5d   : > { %3949 = vmatmul.mubr.msk.bf16.gmra.mrb[32].mxu1 %vm455_vm3, %v4900_v32  ;;  %v2391_v32 = vrot.slane %v4763_v3, 3 }
  0x5e   : > { %3954 = vmatprep.mubr.msk.bf16.mxu1 %vm455_vm3, %v4661_v6 }
  0x5f   : > { %4119 = vmatmul.mubr.msk.bf16.gmra.mrb[12].mxu0 %vm455_vm3, %v5040_v29  ;;  %v2392_v33 = vor.u32 %v2391_v32, %v2390_v55  ;;  %v1858_v55 = vrot.slane %v4932_v47, 2  ;;  %v5126_v32 = vsel %vm1828_vm4, %v1854_v10, %v1856_v43 }
  0x60   : > { %4122 = vmatprep.mubr.msk.bf16.mxu0 %vm455_vm3, %v5048_v49 }
  0x61   : > { %v5071_v3 = vsel %vm2370_vm5, %v2388_v53, %v2392_v33  ;;  %v5086_v14 = vsel %vm2370_vm5, %v2392_v33, %v2396_v62  ;;  %v5111_v53 = vsel %vm1828_vm4, %v1852_v44, %v1854_v10  ;;  %v5131_v11 = vsel %vm1828_vm4, %v1856_v43, %v1858_v55 }
  0x62   : > { %v5141_v33 = vsel %vm1828_vm4, %v1858_v55, %v1860_v61  ;;  %v2511_v62 = vsel %vm510_vm0, %v4948_v58, 0  ;;  %v930_v58 = vrot.slane %v4664_v7, 1  ;;  %v946_v44 = vrot.slane %v4786_v23, 1 }
  0x63   : > { %v954_v61 = vrot.slane %v4857_v38, 1 }
  0x64   : > { %v5268_v45 = vsel %vm928_vm6, %v944_v40, %v946_v44  ;;  %v5285_v43 = vsel %vm928_vm6, %v946_v44, %v948_v19 }
  0x65   : > { %3955 = vmatmul.mubr.msk.bf16.vlgmr.msra.gmra.mrb[0].mxu1 %vm455_vm3, %v4664_v7 }
  0x66   : > { %3958 = vmatprep.mubr.msk.bf16.mxu1 %vm455_vm3, %v4668_v9  ;;  %3991 = vmatpush3.bf16.msra.mxu1 %v1021_v57  ;;  %v5145_v57 = vcombine.low %v4953_v51, %v4953_v51 }
  0x67   : > { %4549 = vmatprep.subr.msk.bf16.mxu1 %vm510_vm0, %v5068_v4  ;;  %4123 = vmatmul.mubr.msk.bf16.gmra.mrb[16].mxu0 %vm455_vm3, %v5076_v15 }
  0x68   : > { %4126 = vmatprep.mubr.msk.bf16.mxu0 %vm455_vm3, %v5081_v36  ;;  %v1864_v16 = vrot.slane %v5145_v57, 2 }
  0x6a   : > { %v1865_v51 = vsel %vm1828_vm4, %v4977_v48, %v1864_v16  ;;  %v5176_v48 = vld [vmem:[%s5753_s1 + $0x10] sm:$0x3] }
  0x6b   : > { %v2821_v16 = vsel %vm510_vm0, %v5176_v48, 0 }
  0x6d   : > { %3959 = vmatmul.mubr.msk.bf16.gmra.mrb[4].mxu1 %vm455_vm3, %v4682_v17 }
  0x6e   : > { %3962 = vmatprep.mubr.msk.bf16.mxu1 %vm455_vm3, %v4685_v18 }
  0x6f   : > { %4127 = vmatmul.mubr.msk.bf16.gmra.mrb[20].mxu0 %vm455_vm3, %v5104_v35 }
  0x70   : > { %4130 = vmatprep.mubr.msk.bf16.mxu0 %vm455_vm3, %v5111_v53 }
  0x75   : > { %3963 = vmatmul.mubr.msk.bf16.gmra.mrb[8].mxu1 %vm455_vm3, %v4697_v31 }
  0x76   : > { %3966 = vmatprep.mubr.msk.bf16.mxu1 %vm455_vm3, %v4714_v41 }
  0x77   : > { %4131 = vmatmul.mubr.msk.bf16.gmra.mrb[24].mxu0 %vm455_vm3, %v5126_v32 }
  0x78   : > { %4134 = vmatprep.mubr.msk.bf16.mxu0 %vm455_vm3, %v5131_v11 }
  0x7d   : > { %3967 = vmatmul.mubr.msk.bf16.gmra.mrb[12].mxu1 %vm455_vm3, %v4731_v50 }
  0x7e   : > { %3970 = vmatprep.mubr.msk.bf16.mxu1 %vm455_vm3, %v4759_v63 }
  0x7f   : > { %4135 = vmatmul.mubr.msk.bf16.gmra.mrb[28].mxu0 %vm455_vm3, %v5141_v33 }
  0x80   : > { %4138 = vmatprep.mubr.msk.bf16.mxu0 %vm455_vm3, %v5151_v34 }
  0x85   : > { %3971 = vmatmul.mubr.msk.bf16.gmra.mrb[16].mxu1 %vm455_vm3, %v4786_v23 }
  0x86   : > { %3974 = vmatprep.mubr.msk.bf16.mxu1 %vm455_vm3, %v4793_v28 }
  0x87   : > { %4139 = vmatmul.mubr.msk.bf16.gmra.mrb[32].mxu0 %vm455_vm3, %v1865_v51  ;;  %v956_v51 = vrot.slane %v4894_v21, 1 }
  0x88   : > { %4144 = vmatprep.mubr.msk.bf16.mxu0 %vm455_vm3, %v4928_v20 }
  0x8d   : > { %3975 = vmatmul.mubr.msk.bf16.gmra.mrb[20].mxu1 %vm455_vm3, %v4820_v56 }
  0x8e   : > { %3978 = vmatprep.mubr.msk.bf16.mxu1 %vm455_vm3, %v4848_v25 }
  0x8f   : > { %4145 = vmatmul.mubr.msk.bf16.vlgmr.msra.gmra.mrb[0].mxu0 %vm455_vm3, %v4938_v46  ;;  %v929_v46 = vrot.slane %v4661_v6, 1  ;;  %v934_v6 = vrot.slane %v4682_v17, 1 }
  0x90   : > { %4181 = vmatpush3.bf16.msra.mxu0 %v2511_v62  ;;  %4148 = vmatprep.mubr.msk.bf16.mxu0 %vm455_vm3, %v4982_v2  ;;  %v958_v62 = vrot.slane %v4905_v8, 1 }
  0x91   : > { %4555 = vmatprep.subr.msk.bf16.mxu0 %vm510_vm0, %v5176_v48  ;;  %v931_v20 = vsel %vm928_vm6, %v929_v46, %v930_v58  ;;  %v960_v48 = vrot.slane %v4932_v47, 1 }
  0x92   : > { %v5324_v46 = vsel %vm928_vm6, %v956_v51, %v958_v62 }
  0x95   : > { %3979 = vmatmul.mubr.msk.bf16.gmra.mrb[24].mxu1 %vm455_vm3, %v4857_v38 }
  0x96   : > { %3982 = vmatprep.mubr.msk.bf16.mxu1 %vm455_vm3, %v4894_v21 }
  0x97   : > { %4149 = vmatmul.mubr.msk.bf16.gmra.mrb[4].mxu0 %vm455_vm3, %v4993_v59  ;;  %v932_v59 = vrot.slane %v4668_v9, 1 }
  0x98   : > { %4152 = vmatprep.mubr.msk.bf16.mxu0 %vm455_vm3, %v5015_v30  ;;  %v1253_v30 = vsel %vm510_vm0, %v5068_v4, 0 }
  0x99   : > { %v5213_v7 = vsel %vm928_vm6, %v930_v58, %v932_v59  ;;  %v5216_v2 = vsel %vm928_vm6, %v932_v59, %v934_v6 }
  0x9d   : > { %3983 = vmatmul.mubr.msk.bf16.gmra.mrb[28].mxu1 %vm455_vm3, %v4905_v8 }
  0x9e   : > { %3986 = vmatprep.mubr.msk.bf16.mxu1 %vm455_vm3, %v4932_v47 }
  0x9f   : > { %4153 = vmatmul.mubr.msk.bf16.gmra.mrb[8].mxu0 %vm455_vm3, %v5022_v27  ;;  %v936_v27 = vrot.slane %v4685_v18, 1 }
  0xa0   : > { %4156 = vmatprep.mubr.msk.bf16.mxu0 %vm455_vm3, %v5040_v29  ;;  %v938_v29 = vrot.slane %v4697_v31, 1 }
  0xa2   : > { %v5236_v4 = vsel %vm928_vm6, %v936_v27, %v938_v29 }
  0xa5   : > { %3987 = vmatmul.mubr.msk.bf16.gmra.mrb[32].mxu1 %vm455_vm3, %v4840_v13 }
  0xa6   : > { %3992 = vmatprep.mubr.msk.bf16.mxu1 %vm455_vm3, %v931_v20  ;;  %v5807_v20 = vld [vmem:[#allocation5_spill] sm:$0xff] }
  0xa7   : > { %4157 = vmatmul.mubr.msk.bf16.gmra.mrb[12].mxu0 %vm455_vm3, %v5048_v49  ;;  %v5233_v49 = vsel %vm928_vm6, %v934_v6, %v936_v27  ;;  %v964_v59 = vrot.slane %v5807_v20, 1  ;;  %v5808_v6 = vld [vmem:[#allocation4_spill] sm:$0xff]  ;;  %v5818_v20 = vld [vmem:[#allocation14_spill] sm:$0xff] }
  0xa8   : > { %4160 = vmatprep.mubr.msk.bf16.mxu0 %vm455_vm3, %v5076_v15  ;;  %v942_v15 = vrot.slane %v4731_v50, 1 }
  0xaa   : > { %v5265_v10 = vsel %vm928_vm6, %v942_v15, %v944_v40  ;;  %v5811_v40 = vld [vmem:[#allocation8_spill] sm:$0xff] }
  0xab   : > { %v2411_v44 = vrot.slane %v5811_v40, 3 }
  0xad   : > { %3993 = vmatmul.mubr.msk.bf16.vlgmr.msra.gmra.mrb[0].mxu1 %vm455_vm3, %v5213_v7 }
  0xae   : > { %3996 = vmatprep.mubr.msk.bf16.mxu1 %vm455_vm3, %v5216_v2  ;;  %4029 = vmatpush3.bf16.msra.mxu1 %v1253_v30  ;;  %v5809_v30 = vld [vmem:[#allocation3_spill] sm:$0xff] }
  0xaf   : > { %4551 = vmatprep.subr.msk.bf16.mxu1 %vm510_vm0, %v4631_v0  ;;  %4161 = vmatmul.mubr.msk.bf16.gmra.mrb[16].mxu0 %vm455_vm3, %v5081_v36  ;;  %v940_v0 = vrot.slane %v4714_v41, 1  ;;  %v2407_v27 = vrot.slane %v5809_v30, 3 }
  0xb0   : > { %4164 = vmatprep.mubr.msk.bf16.mxu0 %vm455_vm3, %v5104_v35  ;;  %v950_v35 = vrot.slane %v4820_v56, 1 }
  0xb1   : > { %v5249_v36 = vsel %vm928_vm6, %v938_v29, %v940_v0  ;;  %v5252_v22 = vsel %vm928_vm6, %v940_v0, %v942_v15  ;;  %v5810_v0 = vld [vmem:[#allocation9_spill] sm:$0xff] }
  0xb2   : > { %v5288_v55 = vsel %vm928_vm6, %v948_v19, %v950_v35  ;;  %v2410_v15 = vrot.slane %v5810_v0, 2 }
  0xb5   : > { %3997 = vmatmul.mubr.msk.bf16.gmra.mrb[4].mxu1 %vm455_vm3, %v5233_v49 }
  0xb6   : > { %4000 = vmatprep.mubr.msk.bf16.mxu1 %vm455_vm3, %v5236_v4 }
  0xb7   : > { %4165 = vmatmul.mubr.msk.bf16.gmra.mrb[20].mxu0 %vm455_vm3, %v5111_v53  ;;  %v2144_v53 = vrot.slane %v5273_v52, 2 }
  0xb8   : > { %4168 = vmatprep.mubr.msk.bf16.mxu0 %vm455_vm3, %v5126_v32  ;;  %v5806_v32 = vrot.slane %v4963_v12, 2 }
  0xbd   : > { %4001 = vmatmul.mubr.msk.bf16.gmra.mrb[8].mxu1 %vm455_vm3, %v5249_v36 }
  0xbe   : > { %4004 = vmatprep.mubr.msk.bf16.mxu1 %vm455_vm3, %v5252_v22 }
  0xbf   : > { %4169 = vmatmul.mubr.msk.bf16.gmra.mrb[24].mxu0 %vm455_vm3, %v5131_v11  ;;  %v2145_v11 = vsel %vm1828_vm4, %v5806_v32, %v2144_v53  ;;  %v5813_v53 = vld [vmem:[#allocation10_spill] sm:$0xff]  ;;  %v2412_v32 = vor.u32 %v2411_v44, %v2410_v15 }
  0xc0   : > { %4172 = vmatprep.mubr.msk.bf16.mxu0 %vm455_vm3, %v5141_v33  ;;  %v5821_v15 = vld [vmem:[#allocation6_spill] sm:$0xff] }
  0xc1   : > { %v2430_v44 = vrot.slane %v5821_v15, 2 }
  0xc5   : > { %4005 = vmatmul.mubr.msk.bf16.gmra.mrb[12].mxu1 %vm455_vm3, %v5265_v10 }
  0xc6   : > { %4008 = vmatprep.mubr.msk.bf16.mxu1 %vm455_vm3, %v5268_v45 }
  0xc7   : > { %4173 = vmatmul.mubr.msk.bf16.gmra.mrb[28].mxu0 %vm455_vm3, %v5151_v34 }
  0xc8   : > { %4176 = vmatprep.mubr.msk.bf16.mxu0 %vm455_vm3, %v4989_v1  ;;  %v952_v1 = vrot.slane %v4848_v25, 1 }
  0xca   : > { %v5303_v33 = vsel %vm928_vm6, %v950_v35, %v952_v1  ;;  %v5306_v34 = vsel %vm928_vm6, %v952_v1, %v954_v61 }
  0xcd   : > { %4009 = vmatmul.mubr.msk.bf16.gmra.mrb[16].mxu1 %vm455_vm3, %v5285_v43 }
  0xce   : > { %4012 = vmatprep.mubr.msk.bf16.mxu1 %vm455_vm3, %v5288_v55 }
  0xcf   : > { %4177 = vmatmul.mubr.msk.bf16.gmra.mrb[32].mxu0 %vm455_vm3, %v2145_v11 }
  0xd0   : > { %4182 = vmatprep.mubr.msk.bf16.mxu0 %vm455_vm3, %v5018_v26  ;;  %v5321_v26 = vsel %vm928_vm6, %v954_v61, %v956_v51 }
  0xd5   : > { %4013 = vmatmul.mubr.msk.bf16.gmra.mrb[20].mxu1 %vm455_vm3, %v5303_v33 }
  0xd6   : > { %4016 = vmatprep.mubr.msk.bf16.mxu1 %vm455_vm3, %v5306_v34 }
  0xd7   : > { %4183 = vmatmul.mubr.msk.bf16.vlgmr.msra.gmra.mrb[0].mxu0 %vm455_vm3, %v5025_v5  ;;  %v5332_v5 = vrot.slane %v4840_v13, 1 }
  0xd8   : > { %4219 = vmatpush3.bf16.msra.mxu0 %v2821_v16  ;;  %4186 = vmatprep.mubr.msk.bf16.mxu0 %vm455_vm3, %v5043_v24  ;;  %v5339_v24 = vsel %vm928_vm6, %v958_v62, %v960_v48  ;;  %v5815_v16 = vld [vmem:[#allocation11_spill] sm:$0xff]  ;;  %v5816_v62 = vld [vmem:[#allocation2_spill] sm:$0xff] }
  0xd9   : > { %v5343_v58 = vsel %vm928_vm6, %v960_v48, %v5332_v5 }
  0xdd   : > { %4017 = vmatmul.mubr.msk.bf16.gmra.mrb[24].mxu1 %vm455_vm3, %v5321_v26 }
  0xde   : > { %4020 = vmatprep.mubr.msk.bf16.mxu1 %vm455_vm3, %v5324_v46 }
  0xdf   : > { %4187 = vmatmul.mubr.msk.bf16.gmra.mrb[4].mxu0 %vm455_vm3, %v5053_v54  ;;  %v2406_v54 = vrot.slane %v5808_v6, 2 }
  0xe0   : > { %4190 = vmatprep.mubr.msk.bf16.mxu0 %vm455_vm3, %v5071_v3  ;;  %v965_v3 = vsel %vm928_vm6, %v5332_v5, %v964_v59  ;;  %v2423_v59 = vrot.slane %v5818_v20, 3 }
  0xe1   : > { %v2408_v29 = vor.u32 %v2407_v27, %v2406_v54  ;;  %v5820_v27 = vld [vmem:[#allocation16_spill] sm:$0xff] }
  0xe3   : > { %v2409_v19 = vsel %vm2370_vm5, %v5106_v37, %v2408_v29  ;;  %v2413_v1 = vsel %vm2370_vm5, %v2408_v29, %v2412_v32  ;;  %v2419_v37 = vrot.slane %v5815_v16, 3 }
  0xe5   : > { %4021 = vmatmul.mubr.msk.bf16.gmra.mrb[28].mxu1 %vm455_vm3, %v5339_v24 }
  0xe6   : > { %4024 = vmatprep.mubr.msk.bf16.mxu1 %vm455_vm3, %v5343_v58 }
  0xe7   : > { %4191 = vmatmul.mubr.msk.bf16.gmra.mrb[8].mxu0 %vm455_vm3, %v5086_v14  ;;  %v5812_v14 = vld [vmem:[#allocation12_spill] sm:$0xff] }
  0xe8   : > { %4194 = vmatprep.mubr.msk.bf16.mxu0 %vm455_vm3, %v5099_v60  ;;  %v2414_v35 = vrot.slane %v5812_v14, 2  ;;  %v2415_v60 = vrot.slane %v5813_v53, 3 }
  0xea   : > { %v2416_v11 = vor.u32 %v2415_v60, %v2414_v35  ;;  %v5822_v35 = vld [vmem:[#allocation15_spill] sm:$0xff] }
  0xeb   : > { %v1539_v60 = vshrl.u32 %v5822_v35, 16 }
  0xec   : > { %v2417_v51 = vsel %vm2370_vm5, %v2412_v32, %v2416_v11  ;;  %v1542_v32 = vshll.u32 %v5822_v35, 16 }
  0xed   : > { %4025 = vmatmul.mubr.msk.bf16.gmra.mrb[32].mxu1 %vm455_vm3, %v965_v3  ;;  %v2427_v3 = vrot.slane %v5820_v27, 3 }
  0xee   : > { %4030 = vmatprep.mubr.msk.bf16.mxu1 %vm455_vm3, %v5213_v7  ;;  %v5814_v7 = vld [vmem:[#allocation13_spill] sm:$0xff] }
  0xef   : > { %4195 = vmatmul.mubr.msk.bf16.gmra.mrb[12].mxu0 %vm455_vm3, %v5115_v42  ;;  %v2418_v61 = vrot.slane %v5814_v7, 2  ;;  %v5817_v42 = vld [vmem:[#allocation17_spill] sm:$0xff] }
  0xf0   : > { %4198 = vmatprep.mubr.msk.bf16.mxu0 %vm455_vm3, %v2409_v19  ;;  %v2422_v48 = vrot.slane %v5817_v42, 2  ;;  %v2431_v19 = vrot.slane %v4860_v39, 3 }
  0xf2   : > { %v2424_v6 = vor.u32 %v2423_v59, %v2422_v48 }
  0xf5   : > { %4031 = vmatmul.mubr.msk.bf16.vlgmr.msra.gmra.mrb[0].mxu1 %vm455_vm3, %v5216_v2  ;;  %v2420_v2 = vor.u32 %v2419_v37, %v2418_v61  ;;  %v2434_v37 = vrot.slane %v1539_v60, 2 }
  0xf6   : > { %4034 = vmatprep.mubr.msk.bf16.mxu1 %vm455_vm3, %v5233_v49  ;;  %4257 = vmatpush3.bf16.msra.mxu1 %v5816_v62  ;;  %v5819_v49 = vld [vmem:[#allocation18_spill] sm:$0xff] }
  0xf7   : > { %4199 = vmatmul.mubr.msk.bf16.gmra.mrb[16].mxu0 %vm455_vm3, %v2413_v1  ;;  %v2421_v54 = vsel %vm2370_vm5, %v2416_v11, %v2420_v2  ;;  %v2426_v30 = vrot.slane %v5819_v49, 2  ;;  %v2425_v29 = vsel %vm2370_vm5, %v2420_v2, %v2424_v6  ;;  %v2432_v11 = vor.u32 %v2431_v19, %v2430_v44 }
  0xf8   : > { %4202 = vmatprep.mubr.msk.bf16.mxu0 %vm455_vm3, %v2417_v51  ;;  %v2439_v1 = vshrl.u32 %v4963_v12, 16  ;;  %v2435_v51 = vrot.slane %v1542_v32, 3  ;;  %v2448_v2 = vshrl.u32 %v5273_v52, 16  ;;  %v2729_v19 = vrot.slane %v4668_v9, 3 }
  0xf9   : > { %v2734_v9 = vrot.slane %v4697_v31, 3 }
  0xfa   : > { %v2441_v48 = vrot.slane %v2439_v1, 2  ;;  %v1514_v1 = vrot.slane %v5810_v0, 1  ;;  %v2746_v0 = vrot.slane %v4820_v56, 3 }
  0xfd   : > { %4035 = vmatmul.mubr.msk.bf16.gmra.mrb[4].mxu1 %vm455_vm3, %v5236_v4  ;;  %v2428_v4 = vor.u32 %v2427_v3, %v2426_v30 }
  0xfe   : > { %4038 = vmatprep.mubr.msk.bf16.mxu1 %vm455_vm3, %v5249_v36  ;;  %v2442_v36 = vshll.u32 %v4963_v12, 16 }
  0xff   : > { %4203 = vmatmul.mubr.msk.bf16.gmra.mrb[20].mxu0 %vm455_vm3, %v2421_v54  ;;  %v2429_v61 = vsel %vm2370_vm5, %v2424_v6, %v2428_v4  ;;  %v2433_v62 = vsel %vm2370_vm5, %v2428_v4, %v2432_v11  ;;  %v2451_v6 = vshll.u32 %v5273_v52, 16  ;;  %v2730_v4 = vrot.slane %v4682_v17, 3 }
 0x100   : > { %4206 = vmatprep.mubr.msk.bf16.mxu0 %vm455_vm3, %v2425_v29  ;;  %v2444_v59 = vrot.slane %v2442_v36, 3  ;;  %v1515_v36 = vrot.slane %v5811_v40, 2  ;;  %v1519_v40 = vrot.slane %v5813_v53, 2 }
 0x101   : > { %v2453_v3 = vrot.slane %v2451_v6, 3  ;;  %v1527_v6 = vrot.slane %v5818_v20, 2 }
 0x102   : > { %v2445_v54 = vor.u32 %v2444_v59, %v2441_v48  ;;  %v1522_v48 = vrot.slane %v5814_v7, 1  ;;  %v1523_v59 = vrot.slane %v5815_v16, 2  ;;  %v2750_v7 = vrot.slane %v4857_v38, 3 }
 0x103   : > { %v1526_v16 = vrot.slane %v5817_v42, 1  ;;  %v2752_v42 = vrot.slane %v4894_v21, 3 }
 0x105   : > { %4039 = vmatmul.mubr.msk.bf16.gmra.mrb[8].mxu1 %vm455_vm3, %v5252_v22  ;;  %v2436_v22 = vor.u32 %v2435_v51, %v2434_v37  ;;  %v1516_v37 = vor.u32 %v1515_v36, %v1514_v1  ;;  %v5823_v51 = vld [vmem:[#allocation7_spill] sm:$0xff]  ;;  %v2753_v21 = vsel %vm2728_vm7, %v2750_v7, %v2752_v42 }
 0x106   : > { %4042 = vmatprep.mubr.msk.bf16.mxu1 %vm455_vm3, %v5265_v10  ;;  %v2450_v10 = vrot.slane %v2448_v2, 2  ;;  %v1524_v2 = vor.u32 %v1523_v59, %v1522_v48 }
 0x107   : > { %4207 = vmatmul.mubr.msk.bf16.gmra.mrb[24].mxu0 %vm455_vm3, %v2429_v61  ;;  %v2437_v30 = vsel %vm2370_vm5, %v2432_v11, %v2436_v22  ;;  %v2446_v29 = vsel %vm2370_vm5, %v2436_v22, %v2445_v54  ;;  %v2732_v11 = vrot.slane %v4685_v18, 3  ;;  %v2738_v18 = vrot.slane %v4731_v50, 3 }
 0x108   : > { %4210 = vmatprep.mubr.msk.bf16.mxu0 %vm455_vm3, %v2433_v62  ;;  %v2454_v44 = vor.u32 %v2453_v3, %v2450_v10  ;;  %v2742_v50 = vrot.slane %v4786_v23, 3  ;;  %v2744_v23 = vrot.slane %v4793_v28, 3  ;;  %v1517_v62 = vsel %vm1470_vm2, %v5823_v51, %v1516_v37 }
 0x109   : > { %v2733_v17 = vsel %vm2728_vm7, %v2730_v4, %v2732_v11  ;;  %v1531_v10 = vrot.slane %v5820_v27, 2  ;;  %v1534_v27 = vrot.slane %v5821_v15, 1  ;;  %v1548_v15 = vshrl.u32 %v5145_v57, 16 }
 0x10a   : > { %v2745_v22 = vsel %vm2728_vm7, %v2742_v50, %v2744_v23  ;;  %v2747_v28 = vsel %vm2728_vm7, %v2744_v23, %v2746_v0 }
 0x10d   : > { %4043 = vmatmul.mubr.msk.bf16.gmra.mrb[12].mxu1 %vm455_vm3, %v5268_v45  ;;  %v2455_v45 = vsel %vm2370_vm5, %v2445_v54, %v2454_v44  ;;  %v1535_v44 = vrot.slane %v4860_v39, 2  ;;  %v1551_v39 = vshll.u32 %v5145_v57, 16 }
 0x10e   : > { %4046 = vmatprep.mubr.msk.bf16.mxu1 %vm455_vm3, %v5285_v43  ;;  %v2731_v43 = vsel %vm2728_vm7, %v2729_v19, %v2730_v4  ;;  %v1541_v4 = vrot.slane %v1539_v60, 1  ;;  %v2756_v60 = vrot.slane %v4932_v47, 3  ;;  %v2760_v47 = vrot.slane %v5822_v35, 3 }
 0x10f   : > { %4211 = vmatmul.mubr.msk.bf16.gmra.mrb[28].mxu0 %vm455_vm3, %v2437_v30  ;;  %v1530_v30 = vrot.slane %v5819_v49, 1  ;;  %v2754_v49 = vrot.slane %v4905_v8, 3 }
 0x110   : > { %4214 = vmatprep.mubr.msk.bf16.mxu0 %vm455_vm3, %v2446_v29  ;;  %v1528_v29 = vor.u32 %v1527_v6, %v1526_v16 }
 0x111   : > { %v1532_v38 = vor.u32 %v1531_v10, %v1530_v30  ;;  %v2755_v8 = vsel %vm2728_vm7, %v2752_v42, %v2754_v49 }
 0x112   : > { %v1529_v20 = vsel %vm1470_vm2, %v1524_v2, %v1528_v29 }
 0x113   : > { %v1533_v19 = vsel %vm1470_vm2, %v1528_v29, %v1532_v38 }
 0x115   : > { %4047 = vmatmul.mubr.msk.bf16.gmra.mrb[16].mxu1 %vm455_vm3, %v5288_v55  ;;  %v2735_v55 = vsel %vm2728_vm7, %v2732_v11, %v2734_v9 }
 0x116   : > { %4050 = vmatprep.mubr.msk.bf16.mxu1 %vm455_vm3, %v5303_v33  ;;  %v2736_v33 = vrot.slane %v4714_v41, 3  ;;  %v2740_v41 = vrot.slane %v4759_v63, 3  ;;  %v1244_v63 = vrot.slane %v5145_v57, 1 }
 0x117   : > { %4215 = vmatmul.mubr.msk.bf16.gmra.mrb[32].mxu0 %vm455_vm3, %v2455_v45  ;;  %v1544_v45 = vrot.slane %v1542_v32, 2 }
 0x118   : > { %4220 = vmatprep.mubr.msk.bf16.mxu0 %vm455_vm3, %v2731_v43  ;;  %v2737_v31 = vsel %vm2728_vm7, %v2734_v9, %v2736_v33  ;;  %v2743_v61 = vsel %vm2728_vm7, %v2740_v41, %v2742_v50  ;;  %v1536_v43 = vor.u32 %v1535_v44, %v1534_v27  ;;  %v2758_v9 = vrot.slane %v4840_v13, 3 }
 0x119   : > { %v1545_v11 = vor.u32 %v1544_v45, %v1541_v4  ;;  %v2764_v50 = vrot.slane %v5273_v52, 3 }
 0x11a   : > { %v1537_v32 = vsel %vm1470_vm2, %v1532_v38, %v1536_v43  ;;  %v2759_v57 = vsel %vm2728_vm7, %v2756_v60, %v2758_v9 }
 0x11d   : > { %4051 = vmatmul.mubr.msk.bf16.gmra.mrb[20].mxu1 %vm455_vm3, %v5306_v34  ;;  %v2739_v34 = vsel %vm2728_vm7, %v2736_v33, %v2738_v18  ;;  %v1546_v33 = vsel %vm1470_vm2, %v1536_v43, %v1545_v11 }
 0x11e   : > { %4054 = vmatprep.mubr.msk.bf16.mxu1 %vm455_vm3, %v5321_v26  ;;  %v1242_v26 = vrot.slane %v5822_v35, 1 }
 0x11f   : > { %4221 = vmatmul.mubr.msk.bf16.vlgmr.msra.gmra.mrb[0].mxu0 %vm455_vm3, %v2733_v17  ;;  %v1550_v17 = vrot.slane %v1548_v15, 1 }
 0x120   : > { %4224 = vmatprep.mubr.msk.bf16.mxu0 %vm455_vm3, %v2735_v55  ;;  %v1553_v55 = vrot.slane %v1551_v39, 2 }
 0x125   : > { %4055 = vmatmul.mubr.msk.bf16.gmra.mrb[24].mxu1 %vm455_vm3, %v5324_v46  ;;  %v1243_v46 = vsel %vm928_vm6, %v5332_v5, %v1242_v26  ;;  %v1245_v5 = vsel %vm928_vm6, %v1242_v26, %v1244_v63  ;;  %v2761_v26 = vsel %vm2728_vm7, %v2758_v9, %v2760_v47 }
 0x126   : > { %4058 = vmatprep.mubr.msk.bf16.mxu1 %vm455_vm3, %v5339_v24  ;;  %v2741_v24 = vsel %vm2728_vm7, %v2738_v18, %v2740_v41  ;;  %v2757_v18 = vsel %vm2728_vm7, %v2754_v49, %v2756_v60 }
 0x127   : > { %4225 = vmatmul.mubr.msk.bf16.gmra.mrb[4].mxu0 %vm455_vm3, %v2737_v31  ;;  %v1554_v31 = vor.u32 %v1553_v55, %v1550_v17 }
 0x128   : > { %4228 = vmatprep.mubr.msk.bf16.mxu0 %vm455_vm3, %v2739_v34  ;;  %v2762_v34 = vrot.slane %v4963_v12, 3 }
 0x129   : > { %v1555_v13 = vsel %vm1470_vm2, %v1545_v11, %v1554_v31 }
 0x12a   : > { %v2763_v41 = vsel %vm2728_vm7, %v2760_v47, %v2762_v34 }
 0x12d   : > { %4059 = vmatmul.mubr.msk.bf16.gmra.mrb[28].mxu1 %vm455_vm3, %v5343_v58  ;;  %v1518_v58 = vrot.slane %v5812_v14, 1  ;;  %v2748_v14 = vrot.slane %v4848_v25, 3 }
 0x12e   : > { %4062 = vmatprep.mubr.msk.bf16.mxu1 %vm455_vm3, %v1243_v46  ;;  %v2765_v46 = vsel %vm2728_vm7, %v2762_v34, %v2764_v50 }
 0x12f   : > { %4229 = vmatmul.mubr.msk.bf16.gmra.mrb[8].mxu0 %vm455_vm3, %v2741_v24  ;;  %v1520_v56 = vor.u32 %v1519_v40, %v1518_v58  ;;  %v2749_v3 = vsel %vm2728_vm7, %v2746_v0, %v2748_v14  ;;  %v2751_v25 = vsel %vm2728_vm7, %v2748_v14, %v2750_v7  ;;  %v5568_v7 = vld [vmem:[%s5755_s3] ss:$0 sm:$0xff] }
 0x130   : > { %4232 = vmatprep.mubr.msk.bf16.mxu0 %vm455_vm3, %v2743_v61 }
 0x131   : > { %v1521_v53 = vsel %vm1470_vm2, %v1516_v37, %v1520_v56  ;;  %v1525_v54 = vsel %vm1470_vm2, %v1520_v56, %v1524_v2  ;;  %v5563_v2 = vld [vmem:[%s5754_s2] ss:$0 sm:$0xff] }
 0x135   : > { %4063 = vmatmul.mubr.msk.bf16.gmra.mrb[32].mxu1 %vm455_vm3, %v1245_v5 }
 0x136   : > { %4088 = vmatprep.mubr.msk.bf16.mxu1 %vm455_vm3, %v1517_v62 }
 0x137   : > { %4233 = vmatmul.mubr.msk.bf16.gmra.mrb[12].mxu0 %vm455_vm3, %v2745_v22 }
 0x138   : > { %4236 = vmatprep.mubr.msk.bf16.mxu0 %vm455_vm3, %v2747_v28 }
 0x13d   : > { %4089 = vmatmul.mubr.msk.bf16.vlgmr.msra.gmra.mrb[20].mxu1 %vm455_vm3, %v1521_v53 }
 0x13e   : > { %4092 = vmatprep.mubr.msk.bf16.mxu1 %vm455_vm3, %v1525_v54 }
 0x13f   : > { %4237 = vmatmul.mubr.msk.bf16.gmra.mrb[16].mxu0 %vm455_vm3, %v2749_v3 }
 0x140   : > { %4240 = vmatprep.mubr.msk.bf16.mxu0 %vm455_vm3, %v2751_v25 }
 0x145   : > { %4093 = vmatmul.mubr.msk.bf16.gmra.mrb[24].mxu1 %vm455_vm3, %v1529_v20 }
 0x146   : > { %4096 = vmatprep.mubr.msk.bf16.mxu1 %vm455_vm3, %v1533_v19 }
 0x147   : > { %4241 = vmatmul.mubr.msk.bf16.gmra.mrb[20].mxu0 %vm455_vm3, %v2753_v21 }
 0x148   : > { %4244 = vmatprep.mubr.msk.bf16.mxu0 %vm455_vm3, %v2755_v8 }
 0x14d   : > { %4097 = vmatmul.mubr.msk.bf16.gmra.mrb[28].mxu1 %vm455_vm3, %v1537_v32 }
 0x14e   : > { %4100 = vmatprep.mubr.msk.bf16.mxu1 %vm455_vm3, %v1546_v33 }
 0x14f   : > { %4245 = vmatmul.mubr.msk.bf16.gmra.mrb[24].mxu0 %vm455_vm3, %v2757_v18 }
 0x150   : > { %4248 = vmatprep.mubr.msk.bf16.mxu0 %vm455_vm3, %v2759_v57 }
 0x155   : > { %4101 = vmatmul.mubr.msk.bf16.gmra.mrb[32].mxu1 %vm455_vm3, %v1555_v13 }
 0x157   : > { %4249 = vmatmul.mubr.msk.bf16.gmra.mrb[28].mxu0 %vm455_vm3, %v2761_v26 }
 0x158   : > { %4252 = vmatprep.mubr.msk.bf16.mxu0 %vm455_vm3, %v2763_v41 }
 0x15f   : > { %4253 = vmatmul.mubr.msk.bf16.gmra.mrb[32].mxu0 %vm455_vm3, %v2765_v46 }
 0x1c8   : > { %v4032_v35 = vpop.f32.mrb[0].mxu1 }
 0x1c9   : > { %v1289_v1 = vpop.f32.mrb[1].mxu1 }
 0x1ca   : > { %v4033_v36 = vpop.f32.mrb[2].mxu1 }
 0x1cb   : > { %v1292_v12 = vpop.f32.mrb[3].mxu1 }
 0x1d0   : > { %v4036_v24 = vpop.f32.mrb[4].mxu1 }
 0x1d1   : > { %v1305_v61 = vpop.f32.mrb[5].mxu1 }
 0x1d2   : > { %v4037_v63 = vpop.f32.mrb[6].mxu1 }
 0x1d3   : > { %v1308_v37 = vpop.f32.mrb[7].mxu1 }
 0x1d8   : > { %v5534_v23 = vpop.f32.mrb[8].mxu1 }
 0x1d9   : > { %v5536_v5 = vpop.f32.mrb[9].mxu1 }
 0x1da   : > { %v5538_v0 = vpop.f32.mrb[10].mxu1 }
 0x1db   : > { %v5540_v52 = vpop.f32.mrb[11].mxu1 }
 0x1e0   : > { %v5542_v58 = vpop.f32.mrb[12].mxu1 }
 0x1e1   : > { %v5544_v40 = vpop.f32.mrb[13].mxu1 }
 0x1e2   : > { %v5546_v51 = vpop.f32.mrb[14].mxu1 }
 0x1e3   : > { %v5548_v62 = vpop.f32.mrb[15].mxu1 }
 0x1e8   : > { %v5550_v48 = vpop.f32.mrb[16].mxu1 }
 0x1e9   : > { %v5552_v59 = vpop.f32.mrb[17].mxu1 }
 0x1ea   : > { %v5554_v22 = vpop.f32.mrb[18].mxu1 }
 0x1eb   : > { %v5556_v28 = vpop.f32.mrb[19].mxu1 }
 0x1f2   : > { %v4222_v56 = vpop.f32.mrb[0].mxu0 }
 0x1f3   : > { %v4258_v14 = vadd.f32 %v4222_v56, %v4032_v35  ;;  %v2857_v53 = vpop.f32.mrb[1].mxu0 }
 0x1f4   : > { %v4259_v16 = vadd.f32 %v2857_v53, %v1289_v1  ;;  %v4223_v6 = vpop.f32.mrb[2].mxu0 }
 0x1f5   : > { %v3045_v54 = vmul.f32 %v4258_v14, %v5563_v2  ;;  %v4260_v30 = vadd.f32 %v4223_v6, %v4033_v36  ;;  %v2860_v10 = vpop.f32.mrb[3].mxu0 }
 0x1f6   : > { %v3043_v3 = vmul.f32 %v4259_v16, %v5563_v2  ;;  %v4261_v25 = vadd.f32 %v2860_v10, %v1292_v12 }
 0x1f7   : > { %v3088_v29 = vadd.f32 %v5568_v7, %v3045_v54  ;;  %v3046_v38 = vmul.f32 %v4260_v30, %v5563_v2 }
 0x1f8   : > { %v3086_v42 = vadd.f32 %v5568_v7, %v3043_v3  ;;  %v3044_v20 = vmul.f32 %v4261_v25, %v5563_v2 }
 0x1f9   : > { %vm3124_vm8 = vcmp.ge.f32.partialorder %v3088_v29, 0.0  ;;  %v3160_v49 = vmul.f32 0.1, %v3088_v29  ;;  %v3089_v27 = vadd.f32 %v5568_v7, %v3046_v38 }
 0x1fa   : > { %vm3122_vm10 = vcmp.ge.f32.partialorder %v3086_v42, 0.0  ;;  %v3158_v44 = vmul.f32 0.1, %v3086_v42  ;;  %v3087_v19 = vadd.f32 %v5568_v7, %v3044_v20  ;;  %v4226_v4 = vpop.f32.mrb[4].mxu0 }
 0x1fb   : > { %v3196_v45 = vsel %vm3124_vm8, %v3088_v29, %v3160_v49  ;;  %vm3125_vm11 = vcmp.ge.f32.partialorder %v3089_v27, 0.0  ;;  %v3161_v21 = vmul.f32 0.1, %v3089_v27  ;;  %v4262_v8 = vadd.f32 %v4226_v4, %v4036_v24  ;;  %v2873_v43 = vpop.f32.mrb[5].mxu0 }
 0x1fc   : > { %v3709_v15 = vpack.c.bf16 %v3196_v45, %v3196_v45  ;;  %v3194_v39 = vsel %vm3122_vm10, %v3086_v42, %v3158_v44  ;;  %vm3123_vm12 = vcmp.ge.f32.partialorder %v3087_v19, 0.0  ;;  %v3159_v11 = vmul.f32 0.1, %v3087_v19  ;;  %v4227_v60 = vpop.f32.mrb[6].mxu0 }
 0x1fd   : > { %v3707_v32 = vpack.c.bf16 %v3194_v39, %v3194_v39  ;;  %v3197_v9 = vsel %vm3125_vm11, %v3089_v27, %v3161_v21  ;;  %v3049_v17 = vmul.f32 %v4262_v8, %v5563_v2  ;;  %v4263_v55 = vadd.f32 %v2873_v43, %v1305_v61  ;;  %v2876_v33 = vpop.f32.mrb[7].mxu0 }
 0x1fe   : > { %3377 = vst.msk [vmem:[%s5581_s23 + $0x8] sm:$0xf] %vm3374_vm9, %v3709_v15  ;;  %v3710_v18 = vpack.c.bf16 %v3197_v9, %v3197_v9  ;;  %v3195_v57 = vsel %vm3123_vm12, %v3087_v19, %v3159_v11  ;;  %v4264_v31 = vadd.f32 %v4227_v60, %v4037_v63  ;;  %v4265_v47 = vadd.f32 %v2876_v33, %v1308_v37 }
 0x1ff   : > { %3375 = vst.msk [vmem:[%s5581_s23] sm:$0xf] %vm3374_vm9, %v3707_v32  ;;  %v3708_v13 = vpack.c.bf16 %v3195_v57, %v3195_v57  ;;  %v3092_v34 = vadd.f32 %v5568_v7, %v3049_v17  ;;  %v3047_v26 = vmul.f32 %v4263_v55, %v5563_v2 }
 0x200   : > { %3378 = vst.msk [vmem:[%s5581_s23 + $0xc] sm:$0xf] %vm3374_vm9, %v3710_v18  ;;  %v3050_v41 = vmul.f32 %v4264_v31, %v5563_v2  ;;  %v3048_v50 = vmul.f32 %v4265_v47, %v5563_v2 }
 0x201   : > { %3376 = vst.msk [vmem:[%s5581_s23 + $0x4] sm:$0xf] %vm3374_vm9, %v3708_v13  ;;  %vm3128_vm13 = vcmp.ge.f32.partialorder %v3092_v34, 0.0  ;;  %v3164_v46 = vmul.f32 0.1, %v3092_v34  ;;  %v3090_v35 = vadd.f32 %v5568_v7, %v3047_v26 }
 0x202   : > { %v3093_v1 = vadd.f32 %v5568_v7, %v3050_v41  ;;  %v3091_v36 = vadd.f32 %v5568_v7, %v3048_v50  ;;  %v4230_v12 = vpop.f32.mrb[8].mxu0 }
 0x203   : > { %v3200_v24 = vsel %vm3128_vm13, %v3092_v34, %v3164_v46  ;;  %vm3126_vm14 = vcmp.ge.f32.partialorder %v3090_v35, 0.0  ;;  %v3162_v61 = vmul.f32 0.1, %v3090_v35  ;;  %v4266_v63 = vadd.f32 %v4230_v12, %v5534_v23  ;;  %v2889_v37 = vpop.f32.mrb[9].mxu0 }
 0x204   : > { %v3713_v56 = vpack.c.bf16 %v3200_v24, %v3200_v24  ;;  %vm3129_vm15 = vcmp.ge.f32.partialorder %v3093_v1, 0.0  ;;  %v3165_v14 = vmul.f32 0.1, %v3093_v1  ;;  %vm3127_vm0 = vcmp.ge.f32.partialorder %v3091_v36, 0.0  ;;  %v4231_v53 = vpop.f32.mrb[10].mxu0 }
 0x205   : > { %v3198_v16 = vsel %vm3126_vm14, %v3090_v35, %v3162_v61  ;;  %v3163_v6 = vmul.f32 0.1, %v3091_v36  ;;  %v3053_v54 = vmul.f32 %v4266_v63, %v5563_v2  ;;  %v4267_v30 = vadd.f32 %v2889_v37, %v5536_v5  ;;  %v2892_v10 = vpop.f32.mrb[11].mxu0 }
 0x206   : > { %3381 = vst.msk [vmem:[%s5581_s23 + $0x18] sm:$0xf] %vm3374_vm9, %v3713_v56  ;;  %v3711_v3 = vpack.c.bf16 %v3198_v16, %v3198_v16  ;;  %v3201_v23 = vsel %vm3129_vm15, %v3093_v1, %v3165_v14  ;;  %v4268_v25 = vadd.f32 %v4231_v53, %v5538_v0  ;;  %v4269_v29 = vadd.f32 %v2892_v10, %v5540_v52 }
 0x207   : > { %v3714_v38 = vpack.c.bf16 %v3201_v23, %v3201_v23  ;;  %v3199_v42 = vsel %vm3127_vm0, %v3091_v36, %v3163_v6  ;;  %v3096_v20 = vadd.f32 %v5568_v7, %v3053_v54  ;;  %v3051_v49 = vmul.f32 %v4267_v30, %v5563_v2 }
 0x208   : > { %3379 = vst.msk [vmem:[%s5581_s23 + $0x10] sm:$0xf] %vm3374_vm9, %v3711_v3  ;;  %v3712_v27 = vpack.c.bf16 %v3199_v42, %v3199_v42  ;;  %v3054_v5 = vmul.f32 %v4268_v25, %v5563_v2  ;;  %v3052_v44 = vmul.f32 %v4269_v29, %v5563_v2 }
 0x209   : > { %3382 = vst.msk [vmem:[%s5581_s23 + $0x1c] sm:$0xf] %vm3374_vm9, %v3714_v38  ;;  %vm3132_vm1 = vcmp.ge.f32.partialorder %v3096_v20, 0.0  ;;  %v3168_v19 = vmul.f32 0.1, %v3096_v20  ;;  %v3094_v0 = vadd.f32 %v5568_v7, %v3051_v49 }
 0x20a   : > { %3380 = vst.msk [vmem:[%s5581_s23 + $0x14] sm:$0xf] %vm3374_vm9, %v3712_v27  ;;  %v3097_v52 = vadd.f32 %v5568_v7, %v3054_v5  ;;  %v3095_v4 = vadd.f32 %v5568_v7, %v3052_v44  ;;  %v4234_v45 = vpop.f32.mrb[12].mxu0 }
 0x20b   : > { %v3204_v21 = vsel %vm3132_vm1, %v3096_v20, %v3168_v19  ;;  %vm3130_vm2 = vcmp.ge.f32.partialorder %v3094_v0, 0.0  ;;  %v3166_v8 = vmul.f32 0.1, %v3094_v0  ;;  %v4270_v43 = vadd.f32 %v4234_v45, %v5542_v58  ;;  %v2905_v15 = vpop.f32.mrb[13].mxu0 }
 0x20c   : > { %v3717_v39 = vpack.c.bf16 %v3204_v21, %v3204_v21  ;;  %vm3133_vm3 = vcmp.ge.f32.partialorder %v3097_v52, 0.0  ;;  %v3169_v11 = vmul.f32 0.1, %v3097_v52  ;;  %vm3131_vm4 = vcmp.ge.f32.partialorder %v3095_v4, 0.0  ;;  %v4235_v60 = vpop.f32.mrb[14].mxu0 }
 0x20d   : > { %v3202_v32 = vsel %vm3130_vm2, %v3094_v0, %v3166_v8  ;;  %v3167_v9 = vmul.f32 0.1, %v3095_v4  ;;  %v3057_v17 = vmul.f32 %v4270_v43, %v5563_v2  ;;  %v4271_v55 = vadd.f32 %v2905_v15, %v5544_v40  ;;  %v2908_v33 = vpop.f32.mrb[15].mxu0 }
 0x20e   : > { %3385 = vst.msk [vmem:[%s5581_s23 + $0x28] sm:$0xf] %vm3374_vm9, %v3717_v39  ;;  %v3715_v18 = vpack.c.bf16 %v3202_v32, %v3202_v32  ;;  %v3205_v57 = vsel %vm3133_vm3, %v3097_v52, %v3169_v11  ;;  %v4272_v58 = vadd.f32 %v4235_v60, %v5546_v51  ;;  %v4273_v31 = vadd.f32 %v2908_v33, %v5548_v62 }
 0x20f   : > { %v3718_v47 = vpack.c.bf16 %v3205_v57, %v3205_v57  ;;  %v3203_v13 = vsel %vm3131_vm4, %v3095_v4, %v3167_v9  ;;  %v3100_v34 = vadd.f32 %v5568_v7, %v3057_v17  ;;  %v3055_v26 = vmul.f32 %v4271_v55, %v5563_v2 }
 0x210   : > { %v4090_v41 = vpop.f32.mrb[20].mxu1  ;;  %3383 = vst.msk [vmem:[%s5581_s23 + $0x20] sm:$0xf] %vm3374_vm9, %v3715_v18  ;;  %v3716_v40 = vpack.c.bf16 %v3203_v13, %v3203_v13  ;;  %v3058_v50 = vmul.f32 %v4272_v58, %v5563_v2  ;;  %v3056_v46 = vmul.f32 %v4273_v31, %v5563_v2 }
 0x211   : > { %v5632_v35 = vpop.f32.mrb[21].mxu1  ;;  %3386 = vst.msk [vmem:[%s5581_s23 + $0x2c] sm:$0xf] %vm3374_vm9, %v3718_v47  ;;  %vm3136_vm5 = vcmp.ge.f32.partialorder %v3100_v34, 0.0  ;;  %v3172_v51 = vmul.f32 0.1, %v3100_v34  ;;  %v3098_v62 = vadd.f32 %v5568_v7, %v3055_v26 }
 0x212   : > { %v5637_v1 = vpop.f32.mrb[22].mxu1  ;;  %3384 = vst.msk [vmem:[%s5581_s23 + $0x24] sm:$0xf] %vm3374_vm9, %v3716_v40  ;;  %v3101_v36 = vadd.f32 %v5568_v7, %v3058_v50  ;;  %v3099_v12 = vadd.f32 %v5568_v7, %v3056_v46  ;;  %v4238_v24 = vpop.f32.mrb[16].mxu0 }
 0x213   : > { %v1730_v61 = vpop.f32.mrb[23].mxu1  ;;  %v3208_v63 = vsel %vm3136_vm5, %v3100_v34, %v3172_v51  ;;  %vm3134_vm6 = vcmp.ge.f32.partialorder %v3098_v62, 0.0  ;;  %v3170_v37 = vmul.f32 0.1, %v3098_v62  ;;  %v4274_v56 = vadd.f32 %v4238_v24, %v5550_v48  ;;  %v2921_v14 = vpop.f32.mrb[17].mxu0 }
 0x214   : > { %v3721_v53 = vpack.c.bf16 %v3208_v63, %v3208_v63  ;;  %vm3137_vm7 = vcmp.ge.f32.partialorder %v3101_v36, 0.0  ;;  %v3173_v16 = vmul.f32 0.1, %v3101_v36  ;;  %vm3135_vm8 = vcmp.ge.f32.partialorder %v3099_v12, 0.0  ;;  %v4239_v6 = vpop.f32.mrb[18].mxu0 }
 0x215   : > { %v3206_v54 = vsel %vm3134_vm6, %v3098_v62, %v3170_v37  ;;  %v3171_v30 = vmul.f32 0.1, %v3099_v12  ;;  %v3061_v10 = vmul.f32 %v4274_v56, %v5563_v2  ;;  %v4275_v3 = vadd.f32 %v2921_v14, %v5552_v59  ;;  %v2924_v23 = vpop.f32.mrb[19].mxu0 }
 0x216   : > { %3389 = vst.msk [vmem:[%s5581_s23 + $0x38] sm:$0xf] %vm3374_vm9, %v3721_v53  ;;  %v3719_v25 = vpack.c.bf16 %v3206_v54, %v3206_v54  ;;  %v3209_v29 = vsel %vm3137_vm7, %v3101_v36, %v3173_v16  ;;  %v4276_v48 = vadd.f32 %v4239_v6, %v5554_v22  ;;  %v4277_v38 = vadd.f32 %v2924_v23, %v5556_v28 }
 0x217   : > { %v3722_v42 = vpack.c.bf16 %v3209_v29, %v3209_v29  ;;  %v3207_v20 = vsel %vm3135_vm8, %v3099_v12, %v3171_v30  ;;  %v3104_v49 = vadd.f32 %v5568_v7, %v3061_v10  ;;  %v3059_v27 = vmul.f32 %v4275_v3, %v5563_v2 }
 0x218   : > { %v4094_v5 = vpop.f32.mrb[24].mxu1  ;;  %3387 = vst.msk [vmem:[%s5581_s23 + $0x30] sm:$0xf] %vm3374_vm9, %v3719_v25  ;;  %v3720_v59 = vpack.c.bf16 %v3207_v20, %v3207_v20  ;;  %v3062_v44 = vmul.f32 %v4276_v48, %v5563_v2  ;;  %v3060_v19 = vmul.f32 %v4277_v38, %v5563_v2 }
 0x219   : > { %v5656_v0 = vpop.f32.mrb[25].mxu1  ;;  %3390 = vst.msk [vmem:[%s5581_s23 + $0x3c] sm:$0xf] %vm3374_vm9, %v3722_v42  ;;  %vm3140_vm10 = vcmp.ge.f32.partialorder %v3104_v49, 0.0  ;;  %v3176_v22 = vmul.f32 0.1, %v3104_v49  ;;  %v3102_v28 = vadd.f32 %v5568_v7, %v3059_v27 }
 0x21a   : > { %v5661_v52 = vpop.f32.mrb[26].mxu1  ;;  %3388 = vst.msk [vmem:[%s5581_s23 + $0x34] sm:$0xf] %vm3374_vm9, %v3720_v59  ;;  %v3105_v4 = vadd.f32 %v5568_v7, %v3062_v44  ;;  %v3103_v45 = vadd.f32 %v5568_v7, %v3060_v19  ;;  %v4242_v21 = vpop.f32.mrb[20].mxu0 }
 0x21b   : > { %v1746_v8 = vpop.f32.mrb[27].mxu1  ;;  %v3212_v43 = vsel %vm3140_vm10, %v3104_v49, %v3176_v22  ;;  %vm3138_vm11 = vcmp.ge.f32.partialorder %v3102_v28, 0.0  ;;  %v3174_v15 = vmul.f32 0.1, %v3102_v28  ;;  %v4278_v39 = vadd.f32 %v4242_v21, %v4090_v41  ;;  %v2937_v11 = vpop.f32.mrb[21].mxu0 }
 0x21c   : > { %v3725_v60 = vpack.c.bf16 %v3212_v43, %v3212_v43  ;;  %vm3141_vm12 = vcmp.ge.f32.partialorder %v3105_v4, 0.0  ;;  %v3177_v32 = vmul.f32 0.1, %v3105_v4  ;;  %vm3139_vm13 = vcmp.ge.f32.partialorder %v3103_v45, 0.0  ;;  %v4243_v9 = vpop.f32.mrb[22].mxu0 }
 0x21d   : > { %v3210_v17 = vsel %vm3138_vm11, %v3102_v28, %v3174_v15  ;;  %v3175_v55 = vmul.f32 0.1, %v3103_v45  ;;  %v3065_v33 = vmul.f32 %v4278_v39, %v5563_v2  ;;  %v4279_v18 = vadd.f32 %v2937_v11, %v5632_v35  ;;  %v2940_v57 = vpop.f32.mrb[23].mxu0 }
 0x21e   : > { %3393 = vst.msk [vmem:[%s5581_s23 + $0x48] sm:$0xf] %vm3374_vm9, %v3725_v60  ;;  %v3723_v58 = vpack.c.bf16 %v3210_v17, %v3210_v17  ;;  %v3213_v31 = vsel %vm3141_vm12, %v3105_v4, %v3177_v32  ;;  %v4280_v47 = vadd.f32 %v4243_v9, %v5637_v1  ;;  %v4281_v13 = vadd.f32 %v2940_v57, %v1730_v61 }
 0x21f   : > { %v3726_v34 = vpack.c.bf16 %v3213_v31, %v3213_v31  ;;  %v3211_v26 = vsel %vm3139_vm13, %v3103_v45, %v3175_v55  ;;  %v3108_v41 = vadd.f32 %v5568_v7, %v3065_v33  ;;  %v3063_v40 = vmul.f32 %v4279_v18, %v5563_v2 }
 0x220   : > { %v4098_v50 = vpop.f32.mrb[28].mxu1  ;;  %3391 = vst.msk [vmem:[%s5581_s23 + $0x40] sm:$0xf] %vm3374_vm9, %v3723_v58  ;;  %v3724_v46 = vpack.c.bf16 %v3211_v26, %v3211_v26  ;;  %v3066_v35 = vmul.f32 %v4280_v47, %v5563_v2  ;;  %v3064_v51 = vmul.f32 %v4281_v13, %v5563_v2 }
 0x221   : > { %v5678_v62 = vpop.f32.mrb[29].mxu1  ;;  %3394 = vst.msk [vmem:[%s5581_s23 + $0x4c] sm:$0xf] %vm3374_vm9, %v3726_v34  ;;  %vm3144_vm14 = vcmp.ge.f32.partialorder %v3108_v41, 0.0  ;;  %v3180_v1 = vmul.f32 0.1, %v3108_v41  ;;  %v3106_v36 = vadd.f32 %v5568_v7, %v3063_v40 }
 0x222   : > { %v5683_v12 = vpop.f32.mrb[30].mxu1  ;;  %3392 = vst.msk [vmem:[%s5581_s23 + $0x44] sm:$0xf] %vm3374_vm9, %v3724_v46  ;;  %v3109_v24 = vadd.f32 %v5568_v7, %v3066_v35  ;;  %v3107_v61 = vadd.f32 %v5568_v7, %v3064_v51  ;;  %v4246_v63 = vpop.f32.mrb[24].mxu0 }
 0x223   : > { %v1762_v37 = vpop.f32.mrb[31].mxu1  ;;  %v3216_v56 = vsel %vm3144_vm14, %v3108_v41, %v3180_v1  ;;  %vm3142_vm15 = vcmp.ge.f32.partialorder %v3106_v36, 0.0  ;;  %v3178_v14 = vmul.f32 0.1, %v3106_v36  ;;  %v4282_v53 = vadd.f32 %v4246_v63, %v4094_v5  ;;  %v2953_v16 = vpop.f32.mrb[25].mxu0 }
 0x224   : > { %v3729_v6 = vpack.c.bf16 %v3216_v56, %v3216_v56  ;;  %vm3145_vm0 = vcmp.ge.f32.partialorder %v3109_v24, 0.0  ;;  %v3181_v54 = vmul.f32 0.1, %v3109_v24  ;;  %vm3143_vm1 = vcmp.ge.f32.partialorder %v3107_v61, 0.0  ;;  %v4247_v30 = vpop.f32.mrb[26].mxu0 }
 0x225   : > { %v3214_v10 = vsel %vm3142_vm15, %v3106_v36, %v3178_v14  ;;  %v3179_v3 = vmul.f32 0.1, %v3107_v61  ;;  %v3069_v23 = vmul.f32 %v4282_v53, %v5563_v2  ;;  %v4283_v25 = vadd.f32 %v2953_v16, %v5656_v0  ;;  %v2956_v29 = vpop.f32.mrb[27].mxu0 }
 0x226   : > { %3397 = vst.msk [vmem:[%s5581_s23 + $0x58] sm:$0xf] %vm3374_vm9, %v3729_v6  ;;  %v3727_v48 = vpack.c.bf16 %v3214_v10, %v3214_v10  ;;  %v3217_v38 = vsel %vm3145_vm0, %v3109_v24, %v3181_v54  ;;  %v4284_v42 = vadd.f32 %v4247_v30, %v5661_v52  ;;  %v4285_v20 = vadd.f32 %v2956_v29, %v1746_v8 }
 0x227   : > { %v3730_v49 = vpack.c.bf16 %v3217_v38, %v3217_v38  ;;  %v3215_v27 = vsel %vm3143_vm1, %v3107_v61, %v3179_v3  ;;  %v3112_v5 = vadd.f32 %v5568_v7, %v3069_v23  ;;  %v3067_v59 = vmul.f32 %v4283_v25, %v5563_v2 }
 0x228   : > { %v4102_v44 = vpop.f32.mrb[32].mxu1  ;;  %3395 = vst.msk [vmem:[%s5581_s23 + $0x50] sm:$0xf] %vm3374_vm9, %v3727_v48  ;;  %v3728_v19 = vpack.c.bf16 %v3215_v27, %v3215_v27  ;;  %v3070_v0 = vmul.f32 %v4284_v42, %v5563_v2  ;;  %v3068_v22 = vmul.f32 %v4285_v20, %v5563_v2 }
 0x229   : > { %v1775_v28 = vpop.f32.mrb[33].mxu1  ;;  %3398 = vst.msk [vmem:[%s5581_s23 + $0x5c] sm:$0xf] %vm3374_vm9, %v3730_v49  ;;  %vm3148_vm2 = vcmp.ge.f32.partialorder %v3112_v5, 0.0  ;;  %v3184_v52 = vmul.f32 0.1, %v3112_v5  ;;  %v3110_v4 = vadd.f32 %v5568_v7, %v3067_v59 }
 0x22a   : > { %v4103_v45 = vpop.f32.mrb[34].mxu1  ;;  %3396 = vst.msk [vmem:[%s5581_s23 + $0x54] sm:$0xf] %vm3374_vm9, %v3728_v19  ;;  %v3113_v21 = vadd.f32 %v5568_v7, %v3070_v0  ;;  %v3111_v8 = vadd.f32 %v5568_v7, %v3068_v22  ;;  %v4250_v43 = vpop.f32.mrb[28].mxu0 }
 0x22b   : > { %v1778_v15 = vpop.f32.mrb[35].mxu1  ;;  %v3220_v39 = vsel %vm3148_vm2, %v3112_v5, %v3184_v52  ;;  %vm3146_vm3 = vcmp.ge.f32.partialorder %v3110_v4, 0.0  ;;  %v3182_v11 = vmul.f32 0.1, %v3110_v4  ;;  %v4286_v60 = vadd.f32 %v4250_v43, %v4098_v50  ;;  %v2969_v32 = vpop.f32.mrb[29].mxu0 }
 0x22c   : > { %v3733_v9 = vpack.c.bf16 %v3220_v39, %v3220_v39  ;;  %vm3149_vm4 = vcmp.ge.f32.partialorder %v3113_v21, 0.0  ;;  %v3185_v17 = vmul.f32 0.1, %v3113_v21  ;;  %vm3147_vm5 = vcmp.ge.f32.partialorder %v3111_v8, 0.0  ;;  %v4251_v55 = vpop.f32.mrb[30].mxu0 }
 0x22d   : > { %v3218_v33 = vsel %vm3146_vm3, %v3110_v4, %v3182_v11  ;;  %v3183_v18 = vmul.f32 0.1, %v3111_v8  ;;  %v3073_v57 = vmul.f32 %v4286_v60, %v5563_v2  ;;  %v4287_v58 = vadd.f32 %v2969_v32, %v5678_v62  ;;  %v2972_v31 = vpop.f32.mrb[31].mxu0 }
 0x22e   : > { %3401 = vst.msk [vmem:[%s5581_s23 + $0x68] sm:$0xf] %vm3374_vm9, %v3733_v9  ;;  %v3731_v47 = vpack.c.bf16 %v3218_v33, %v3218_v33  ;;  %v3221_v13 = vsel %vm3149_vm4, %v3113_v21, %v3185_v17  ;;  %v4288_v34 = vadd.f32 %v4251_v55, %v5683_v12  ;;  %v4289_v26 = vadd.f32 %v2972_v31, %v1762_v37 }
 0x22f   : > { %v3734_v41 = vpack.c.bf16 %v3221_v13, %v3221_v13  ;;  %v3219_v40 = vsel %vm3147_vm5, %v3111_v8, %v3183_v18  ;;  %v3116_v50 = vadd.f32 %v5568_v7, %v3073_v57  ;;  %v3071_v46 = vmul.f32 %v4287_v58, %v5563_v2 }
 0x230   : > { %3399 = vst.msk [vmem:[%s5581_s23 + $0x60] sm:$0xf] %vm3374_vm9, %v3731_v47  ;;  %v3732_v35 = vpack.c.bf16 %v3219_v40, %v3219_v40  ;;  %v3074_v51 = vmul.f32 %v4288_v34, %v5563_v2  ;;  %v3072_v62 = vmul.f32 %v4289_v26, %v5563_v2 }
 0x231   : > { %3402 = vst.msk [vmem:[%s5581_s23 + $0x6c] sm:$0xf] %vm3374_vm9, %v3734_v41  ;;  %vm3152_vm6 = vcmp.ge.f32.partialorder %v3116_v50, 0.0  ;;  %v3188_v1 = vmul.f32 0.1, %v3116_v50  ;;  %v3114_v36 = vadd.f32 %v5568_v7, %v3071_v46 }
 0x232   : > { %3400 = vst.msk [vmem:[%s5581_s23 + $0x64] sm:$0xf] %vm3374_vm9, %v3732_v35  ;;  %v3117_v12 = vadd.f32 %v5568_v7, %v3074_v51  ;;  %v3115_v24 = vadd.f32 %v5568_v7, %v3072_v62  ;;  %v4254_v61 = vpop.f32.mrb[32].mxu0 }
 0x233   : > { %v3224_v63 = vsel %vm3152_vm6, %v3116_v50, %v3188_v1  ;;  %vm3150_vm7 = vcmp.ge.f32.partialorder %v3114_v36, 0.0  ;;  %v3186_v37 = vmul.f32 0.1, %v3114_v36  ;;  %v4290_v56 = vadd.f32 %v4254_v61, %v4102_v44  ;;  %v2985_v14 = vpop.f32.mrb[33].mxu0 }
 0x234   : > { %v3737_v53 = vpack.c.bf16 %v3224_v63, %v3224_v63  ;;  %vm3153_vm8 = vcmp.ge.f32.partialorder %v3117_v12, 0.0  ;;  %v3189_v16 = vmul.f32 0.1, %v3117_v12  ;;  %vm3151_vm10 = vcmp.ge.f32.partialorder %v3115_v24, 0.0  ;;  %v4255_v6 = vpop.f32.mrb[34].mxu0 }
 0x235   : > { %v3222_v54 = vsel %vm3150_vm7, %v3114_v36, %v3186_v37  ;;  %v3187_v30 = vmul.f32 0.1, %v3115_v24  ;;  %v3077_v10 = vmul.f32 %v4290_v56, %v5563_v2  ;;  %v4291_v3 = vadd.f32 %v2985_v14, %v1775_v28  ;;  %v2988_v23 = vpop.f32.mrb[35].mxu0 }
 0x236   : > { %3405 = vst.msk [vmem:[%s5581_s23 + $0x78] sm:$0xf] %vm3374_vm9, %v3737_v53  ;;  %v3735_v25 = vpack.c.bf16 %v3222_v54, %v3222_v54  ;;  %v3225_v29 = vsel %vm3153_vm8, %v3117_v12, %v3189_v16  ;;  %v4292_v48 = vadd.f32 %v4255_v6, %v4103_v45  ;;  %v4293_v38 = vadd.f32 %v2988_v23, %v1778_v15 }
 0x237   : > { %v3738_v42 = vpack.c.bf16 %v3225_v29, %v3225_v29  ;;  %v3223_v20 = vsel %vm3151_vm10, %v3115_v24, %v3187_v30  ;;  %v3120_v49 = vadd.f32 %v5568_v7, %v3077_v10  ;;  %v3075_v27 = vmul.f32 %v4291_v3, %v5563_v2 }
 0x238   : > { %3403 = vst.msk [vmem:[%s5581_s23 + $0x70] sm:$0xf] %vm3374_vm9, %v3735_v25  ;;  %v3736_v5 = vpack.c.bf16 %v3223_v20, %v3223_v20  ;;  %v3078_v59 = vmul.f32 %v4292_v48, %v5563_v2  ;;  %v3076_v44 = vmul.f32 %v4293_v38, %v5563_v2 }
 0x239   : > { %3406 = vst.msk [vmem:[%s5581_s23 + $0x7c] sm:$0xf] %vm3374_vm9, %v3738_v42  ;;  %vm3156_vm11 = vcmp.ge.f32.partialorder %v3120_v49, 0.0  ;;  %v3192_v19 = vmul.f32 0.1, %v3120_v49  ;;  %v3118_v0 = vadd.f32 %v5568_v7, %v3075_v27 }
 0x23a   : > { %3404 = vst.msk [vmem:[%s5581_s23 + $0x74] sm:$0xf] %vm3374_vm9, %v3736_v5  ;;  %v3121_v22 = vadd.f32 %v5568_v7, %v3078_v59  ;;  %v3119_v28 = vadd.f32 %v5568_v7, %v3076_v44 }
 0x23b   : > { %v3228_v52 = vsel %vm3156_vm11, %v3120_v49, %v3192_v19  ;;  %vm3154_vm12 = vcmp.ge.f32.partialorder %v3118_v0, 0.0  ;;  %v3190_v4 = vmul.f32 0.1, %v3118_v0 }
 0x23c   : > { %v3741_v2 = vpack.c.bf16 %v3228_v52, %v3228_v52  ;;  %vm3157_vm13 = vcmp.ge.f32.partialorder %v3121_v22, 0.0  ;;  %v3193_v45 = vmul.f32 0.1, %v3121_v22  ;;  %vm3155_vm14 = vcmp.ge.f32.partialorder %v3119_v28, 0.0 }
 0x23d   : > { %v3226_v21 = vsel %vm3154_vm12, %v3118_v0, %v3190_v4  ;;  %v3191_v8 = vmul.f32 0.1, %v3119_v28 }
 0x23e   : > { %3409 = vst.msk [vmem:[%s5581_s23 + $0x88] sm:$0xf] %vm3374_vm9, %v3741_v2  ;;  %v3739_v43 = vpack.c.bf16 %v3226_v21, %v3226_v21  ;;  %v3229_v15 = vsel %vm3157_vm13, %v3121_v22, %v3193_v45 }
 0x23f   : > { %v3742_v39 = vpack.c.bf16 %v3229_v15, %v3229_v15  ;;  %v3227_v11 = vsel %vm3155_vm14, %v3119_v28, %v3191_v8 }
 0x240   : > { %3407 = vst.msk [vmem:[%s5581_s23 + $0x80] sm:$0xf] %vm3374_vm9, %v3739_v43  ;;  %v3740_v7 = vpack.c.bf16 %v3227_v11, %v3227_v11 }
 0x241   : > { %3410 = vst.msk [vmem:[%s5581_s23 + $0x8c] sm:$0xf] %vm3374_vm9, %v3742_v39 }
 0x242   : > { %3408 = vst.msk [vmem:[%s5581_s23 + $0x84] sm:$0xf] %vm3374_vm9, %v3740_v7 }
 0x243 PF: > { %s14_s15 = sadd.s32 1, %s4593_s15  }
 0x244   : > { %p11_p5 = scmp.ge.s32.totalorder %s14_s15, 4  }
 0x246   :  { %13 = sbr.rel (!%p11_p5) target bundleno = 1 (0x1), region = 74 }

</bundles_post_ra>
